<compile_context>
chip_gen: v7x
topology: tpu7x:2x2x1
jax: 0.10.0
libtpu: 0.0.40
codegen_flags: <defaults>
</compile_context>

<pallas_src>
import jax
import jax.numpy as jnp
from jax.experimental import pallas as pl
from jax.experimental.pallas import tpu as pltpu

# ----- synthetic-BERT hyperparameters (lane/sublane-aligned small stand-ins) -----
B = 2            # batch
S = 16           # sequence length (multiple of 8 sublanes)
H = 128          # hidden size (multiple of 128 lanes; stand-in for 1024)
NH = 4           # attention heads
DH = H // NH     # head dim
I = 4 * H        # FFN intermediate (512)
L = 3            # encoder layers
VOCAB = 64
USE_LAYER = -2                  # same as the PyTorch module default
L_USED = L + USE_LAYER + 1      # layers that actually need to run (skip dead tail)
assert 1 <= L_USED <= L

B_TILE = 1                      # batch elements per grid tile ("parallel" axis)
BT = B // B_TILE                # number of batch tiles
R = B_TILE * S                  # activation rows per tile


def _layernorm(x, g, b, eps=1e-12):
    mu = jnp.mean(x, axis=-1, keepdims=True)
    var = jnp.mean((x - mu) ** 2, axis=-1, keepdims=True)
    return (x - mu) * jax.lax.rsqrt(var + eps) * g + b


# --------------------------------------------------------------------------
# Fused encoder kernel: grid = (batch_tiles, L_USED).
# The layer axis is innermost/"arbitrary": activations for the current batch
# tile live in a VMEM scratch across layers; on the last layer step the
# EndpointSpanExtractor('x+y') + emb_P gather runs as an epilogue and writes a
# single lane-dense [B_TILE, 3, H] block.
# --------------------------------------------------------------------------
def fused_encoder_kernel(off_ref,                              # [B,5] int32, SMEM prefetch
                         x0_ref, mask_ref,
                         wqkv_ref, bqkv_ref, wo_ref, bo_ref,
                         ln1g_ref, ln1b_ref,
                         w1_ref, b1_ref, w2_ref, b2_ref,
                         ln2g_ref, ln2b_ref,
                         out_ref,
                         x_sc):
    bt = pl.program_id(0)
    l = pl.program_id(1)

    # Prime the resident activations at the start of each batch tile's sweep.
    @pl.when(l == 0)
    def _():
        x_sc[...] = x0_ref[...]

    x = x_sc[...]                                              # [R, H] f32

    # ---- fused QKV projection: one [H, 3H] matmul (bf16 operands, f32 acc) ----
    qkv = jnp.dot(x.astype(jnp.bfloat16), wqkv_ref[...],
                  preferred_element_type=jnp.float32) + bqkv_ref[...]   # [R, 3H] f32

    mask = mask_ref[...]                                       # [B_TILE, 1, S] additive
    scale = 1.0 / (DH ** 0.5)

    # ---- attention: static loop over heads only; batched einsums over the
    # batch tile; per-head output projection folded into the loop so the
    # context is never reassembled / concatenated across lanes. ----
    attn = jnp.zeros((R, H), jnp.float32)
    for h in range(NH):
        q_h = qkv[:, h * DH:(h + 1) * DH] \
            .reshape(B_TILE, S, DH).astype(jnp.bfloat16)
        k_h = qkv[:, H + h * DH:H + (h + 1) * DH] \
            .reshape(B_TILE, S, DH).astype(jnp.bfloat16)
        v_h = qkv[:, 2 * H + h * DH:2 * H + (h + 1) * DH] \
            .reshape(B_TILE, S, DH).astype(jnp.bfloat16)

        s_h = jnp.einsum('bqd,bkd->bqk', q_h, k_h,
                         preferred_element_type=jnp.float32) * scale + mask
        m = jnp.max(s_h, axis=-1, keepdims=True)
        e = jnp.exp(s_h - m)
        # approx reciprocal -> EUP slot; switch to approx=False for tight-tolerance
        # validation against a PyTorch reference.
        p = e * pl.reciprocal(jnp.sum(e, axis=-1, keepdims=True), approx=True)
        ctx_h = jnp.einsum('bqk,bkd->bqd', p.astype(jnp.bfloat16), v_h,
                           preferred_element_type=jnp.float32)          # [B_TILE,S,DH]
        # Fold the output projection: ctx_h @ Wo[h*DH:(h+1)*DH, :]  (sublane slice).
        attn = attn + jnp.dot(ctx_h.reshape(R, DH).astype(jnp.bfloat16),
                              wo_ref[h * DH:(h + 1) * DH, :],
                              preferred_element_type=jnp.float32)

    attn = attn + bo_ref[...]
    h1 = _layernorm(x + attn, ln1g_ref[...], ln1b_ref[...])

    # ---- FFN ----
    ff = jnp.dot(h1.astype(jnp.bfloat16), w1_ref[...],
                 preferred_element_type=jnp.float32) + b1_ref[...]
    # TODO(synk): pretrained BERT uses the exact erf GELU; tanh approximation here.
    ff = jax.nn.gelu(ff, approximate=True)
    ff = jnp.dot(ff.astype(jnp.bfloat16), w2_ref[...],
                 preferred_element_type=jnp.float32) + b2_ref[...]
    x_sc[...] = _layernorm(h1 + ff, ln2g_ref[...], ln2b_ref[...])

    # ---- epilogue on the last needed layer (encoder layer index L-2):
    #      EndpointSpanExtractor('x+y') + emb_P gather straight out of VMEM,
    #      written as one lane-dense [B_TILE, 3, H] block (rows: span1, span2, P). ----
    @pl.when(l == pl.num_programs(1) - 1)
    def _():
        for b_local in range(B_TILE):                          # static loop
            gb = bt * B_TILE + b_local                         # global batch index
            base = b_local * S

            def row(i, _base=base):
                return x_sc[pl.ds(_base + i, 1), :]            # dynamic row, (1, H)

            # Offsets are inclusive endpoint indices (AllenNLP convention).
            span1 = row(off_ref[gb, 0]) + row(off_ref[gb, 1])  # 'x+y'
            span2 = row(off_ref[gb, 2]) + row(off_ref[gb, 3])
            embp = row(off_ref[gb, 4])
            out_ref[b_local, :, :] = jnp.concatenate([span1, span2, embp], axis=0)


def fused_encoder(x0, mask_add, layers, offsets):
    def wspec(a):
        # Squeezed leading [L] dim -> kernel sees a natural 2-D weight ref.
        return pl.BlockSpec((None,) + a.shape[1:], lambda bt, l, off: (l, 0, 0))

    weight_order = ('wqkv', 'bqkv', 'wo', 'bo', 'ln1g', 'ln1b',
                    'w1', 'b1', 'w2', 'b2', 'ln2g', 'ln2b')
    weight_args = [layers[k] for k in weight_order]
    weight_specs = [wspec(a) for a in weight_args]

    fused = pl.pallas_call(
        fused_encoder_kernel,
        out_shape=jax.ShapeDtypeStruct((B, 3, H), jnp.float32),
        grid_spec=pltpu.PrefetchScalarGridSpec(
            num_scalar_prefetch=1,
            grid=(BT, L_USED),
            in_specs=[pl.BlockSpec((R, H), lambda bt, l, off: (bt, 0)),
                      pl.BlockSpec((B_TILE, 1, S), lambda bt, l, off: (bt, 0, 0))]
                     + weight_specs,
            out_specs=pl.BlockSpec((B_TILE, 3, H), lambda bt, l, off: (bt, 0, 0)),
            scratch_shapes=[pltpu.VMEM((R, H), jnp.float32)],
        ),
        compiler_params=pltpu.CompilerParams(
            # batch tiles independent (megacore); layer axis carries the
            # VMEM-resident activations -> sequential.
            dimension_semantics=("parallel", "arbitrary"),
            vmem_limit_bytes=64 * 1024 * 1024,
        ),
    )(offsets, x0, mask_add, *weight_args)
    return fused


# --------------------------------------------------------------------------
# Parameter init (deterministic, synthetic). Layer weights are stacked along a
# leading [L] axis; matmul weights stored bf16 (f32 accumulation in-kernel).
# --------------------------------------------------------------------------
def init_params(key):
    keys = jax.random.split(key, 3 + L)

    def W(k, shape):
        return jax.random.normal(k, shape, jnp.float32) * 0.02

    params = {
        'word_emb': W(keys[0], (VOCAB, H)),
        'pos_emb': W(keys[1], (S, H)),
        'tt_emb': W(keys[2], (1, H)),          # token_type_ids=None -> type 0
        'emb_ln_g': jnp.ones((1, 1, H), jnp.float32),
        'emb_ln_b': jnp.zeros((1, 1, H), jnp.float32),
    }

    wqkv, bqkv, wo, bo = [], [], [], []
    ln1g, ln1b, w1, b1, w2, b2, ln2g, ln2b = ([] for _ in range(8))
    for l in range(L):
        lk = jax.random.split(keys[3 + l], 6)
        wq, wk, wv = W(lk[0], (H, H)), W(lk[1], (H, H)), W(lk[2], (H, H))
        wqkv.append(jnp.concatenate([wq, wk, wv], axis=1))          # fused [H, 3H]
        bqkv.append(jnp.zeros((1, 3 * H), jnp.float32))
        wo.append(W(lk[3], (H, H)))
        bo.append(jnp.zeros((1, H), jnp.float32))
        ln1g.append(jnp.ones((1, H), jnp.float32))
        ln1b.append(jnp.zeros((1, H), jnp.float32))
        w1.append(W(lk[4], (H, I)))
        b1.append(jnp.zeros((1, I), jnp.float32))
        w2.append(W(lk[5], (I, H)))
        b2.append(jnp.zeros((1, H), jnp.float32))
        ln2g.append(jnp.ones((1, H), jnp.float32))
        ln2b.append(jnp.zeros((1, H), jnp.float32))

    stack = lambda xs: jnp.stack(xs, axis=0)
    params['layers'] = {
        'wqkv': stack(wqkv).astype(jnp.bfloat16),
        'bqkv': stack(bqkv),
        'wo': stack(wo).astype(jnp.bfloat16),
        'bo': stack(bo),
        'ln1g': stack(ln1g), 'ln1b': stack(ln1b),
        'w1': stack(w1).astype(jnp.bfloat16), 'b1': stack(b1),
        'w2': stack(w2).astype(jnp.bfloat16), 'b2': stack(b2),
        'ln2g': stack(ln2g), 'ln2b': stack(ln2b),
    }
    return params


# --------------------------------------------------------------------------
# Full forward (mirrors FeatureExtractionModel.forward).
# --------------------------------------------------------------------------
@jax.jit
def feature_extraction_forward(token_tensor, offsets, params):
    # attention_mask = (token_tensor > 0) -> BERT-style additive key mask,
    # passed once as [B, 1, S]; broadcast over heads happens inside the kernel.
    attn_mask = (token_tensor > 0)
    mask_add = jnp.where(attn_mask, 0.0, -10000.0).astype(jnp.float32)[:, None, :]

    # Embeddings (plain-JAX glue): word + position + token-type(0), then LayerNorm.
    x = params['word_emb'][token_tensor] + params['pos_emb'][None, :, :] \
        + params['tt_emb'][None, :, :]
    x = _layernorm(x, params['emb_ln_g'], params['emb_ln_b'])
    x0 = x.reshape(B * S, H)

    # Fused encoder (layers 0..L-2 only; the last layer is never consumed) with
    # fused span extraction / emb_P gather epilogue; single [B, 3, H] output.
    fused = fused_encoder(x0, mask_add, params['layers'], offsets)
    spans_contexts = fused[:, :2, :]
    emb_P = fused[:, 2, :]
    return spans_contexts, emb_P


if __name__ == "__main__":
    key = jax.random.PRNGKey(0)
    k_param, k_tok, k_off = jax.random.split(key, 3)

    params = init_params(k_param)

    # tokens: positive ids with a few trailing pads (id 0) so the mask matters.
    token_tensor = jax.random.randint(k_tok, (B, S), 1, VOCAB, dtype=jnp.int32)
    token_tensor = token_tensor.at[:, S - 3:].set(0)

    # offsets: (start1, end1, start2, end2, P) — inclusive indices in the unpadded region.
    offsets = jax.random.randint(k_off, (B, 5), 0, S - 4, dtype=jnp.int32)

    spans_contexts, emb_P = feature_extraction_forward(token_tensor, offsets, params)
    jax.block_until_ready((spans_contexts, emb_P))

    assert spans_contexts.shape == (B, 2, H)
    assert emb_P.shape == (B, H)
    assert bool(jnp.all(jnp.isfinite(spans_contexts))) and bool(jnp.all(jnp.isfinite(emb_P)))
    print("KERNEL_OK")
</pallas_src>

<mosaic_0001>
module attributes {stable_mosaic.version = 11 : i64} {
  func.func @fused_encoder_kernel(%arg0: i32, %arg1: i32, %arg2: memref<2x5xi32, #tpu.memory_space<smem>>, %arg3: memref<16x128xf32, #tpu.memory_space<vmem>>, %arg4: memref<1x1x16xf32, #tpu.memory_space<vmem>>, %arg5: memref<1x128x384xbf16, #tpu.memory_space<vmem>>, %arg6: memref<1x1x384xf32, #tpu.memory_space<vmem>>, %arg7: memref<1x128x128xbf16, #tpu.memory_space<vmem>>, %arg8: memref<1x1x128xf32, #tpu.memory_space<vmem>>, %arg9: memref<1x1x128xf32, #tpu.memory_space<vmem>>, %arg10: memref<1x1x128xf32, #tpu.memory_space<vmem>>, %arg11: memref<1x128x512xbf16, #tpu.memory_space<vmem>>, %arg12: memref<1x1x512xf32, #tpu.memory_space<vmem>>, %arg13: memref<1x512x128xbf16, #tpu.memory_space<vmem>>, %arg14: memref<1x1x128xf32, #tpu.memory_space<vmem>>, %arg15: memref<1x1x128xf32, #tpu.memory_space<vmem>>, %arg16: memref<1x1x128xf32, #tpu.memory_space<vmem>>, %arg17: memref<1x3x128xf32, #tpu.memory_space<vmem>>, %arg18: memref<16x128xf32, #tpu.memory_space<vmem>>) attributes {dimension_semantics = [#tpu.dimension_semantics<parallel>, #tpu.dimension_semantics<arbitrary>], iteration_bounds = array<i64: 2, 2>, scalar_prefetch = 1 : i64, scratch_operands = 1 : i64, tpu.core_type = #tpu.core_type<tc>, window_params = [{transform_indices = @transform_0, window_bounds = array<i64: 16, 128>}, {transform_indices = @transform_1, window_bounds = array<i64: 1, 1, 16>}, {transform_indices = @transform_2, window_bounds = array<i64: 1, 128, 384>}, {transform_indices = @transform_3, window_bounds = array<i64: 1, 1, 384>}, {transform_indices = @transform_4, window_bounds = array<i64: 1, 128, 128>}, {transform_indices = @transform_5, window_bounds = array<i64: 1, 1, 128>}, {transform_indices = @transform_6, window_bounds = array<i64: 1, 1, 128>}, {transform_indices = @transform_7, window_bounds = array<i64: 1, 1, 128>}, {transform_indices = @transform_8, window_bounds = array<i64: 1, 128, 512>}, {transform_indices = @transform_9, window_bounds = array<i64: 1, 1, 512>}, {transform_indices = @transform_10, window_bounds = array<i64: 1, 512, 128>}, {transform_indices = @transform_11, window_bounds = array<i64: 1, 1, 128>}, {transform_indices = @transform_12, window_bounds = array<i64: 1, 1, 128>}, {transform_indices = @transform_13, window_bounds = array<i64: 1, 1, 128>}, {transform_indices = @transform_14, window_bounds = array<i64: 1, 3, 128>}]} {
    %c0_i32 = arith.constant 0 : i32
    %0 = arith.cmpi eq, %arg1, %c0_i32 : i32
    %1 = arith.extui %0 : i1 to i32
    %c0_i32_0 = arith.constant 0 : i32
    %2 = arith.cmpi ne, %1, %c0_i32_0 : i32
    scf.if %2 {
      %c0_91 = arith.constant 0 : index
      %c0_92 = arith.constant 0 : index
      %233 = vector.load %arg3[%c0_91, %c0_92] : memref<16x128xf32, #tpu.memory_space<vmem>>, vector<16x128xf32>
      %c0_93 = arith.constant 0 : index
      %c0_94 = arith.constant 0 : index
      %234 = vector.load %arg18[%c0_93, %c0_94] : memref<16x128xf32, #tpu.memory_space<vmem>>, vector<16x128xf32>
      tpu.vector_store %arg18[%c0_93, %c0_94], %233 {strides = array<i32>} : memref<16x128xf32, #tpu.memory_space<vmem>>, vector<16x128xf32>,
    } else {
    }
    %c0 = arith.constant 0 : index
    %c0_1 = arith.constant 0 : index
    %3 = vector.load %arg18[%c0, %c0_1] : memref<16x128xf32, #tpu.memory_space<vmem>>, vector<16x128xf32>
    %4 = arith.truncf %3 : vector<16x128xf32> to vector<16x128xbf16>
    %c0_2 = arith.constant 0 : index
    %c0_3 = arith.constant 0 : index
    %c0_4 = arith.constant 0 : index
    %5 = vector.load %arg5[%c0_2, %c0_3, %c0_4] : memref<1x128x384xbf16, #tpu.memory_space<vmem>>, vector<1x128x384xbf16>
    %6 = vector.shape_cast %5 : vector<1x128x384xbf16> to vector<128x384xbf16>
    %cst = arith.constant dense<0.000000e+00> : vector<16x384xf32>
    %7 = tpu.matmul %4, %6, %cst {dimension_numbers = #tpu.dot_dimension_numbers<[1], [0], [0], [1], [0, 0, 1, 1], [], []>} : vector<16x128xbf16>, vector<128x384xbf16>, vector<16x384xf32> -> vector<16x384xf32>
    %c0_5 = arith.constant 0 : index
    %c0_6 = arith.constant 0 : index
    %c0_7 = arith.constant 0 : index
    %8 = vector.load %arg6[%c0_5, %c0_6, %c0_7] : memref<1x1x384xf32, #tpu.memory_space<vmem>>, vector<1x1x384xf32>
    %9 = vector.shape_cast %8 : vector<1x1x384xf32> to vector<1x384xf32>
    %10 = vector.broadcast %9 : vector<1x384xf32> to vector<16x384xf32>
    %11 = arith.addf %7, %10 : vector<16x384xf32>
    %c0_8 = arith.constant 0 : index
    %c0_9 = arith.constant 0 : index
    %c0_10 = arith.constant 0 : index
    %12 = vector.load %arg4[%c0_8, %c0_9, %c0_10] : memref<1x1x16xf32, #tpu.memory_space<vmem>>, vector<1x1x16xf32>
    %cst_11 = arith.constant 0.000000e+00 : f32
    %13 = vector.broadcast %cst_11 : f32 to vector<16x128xf32>
    %14 = vector.extract_strided_slice %11 {offsets = [0, 0], sizes = [16, 32], strides = [1, 1]} : vector<16x384xf32> to vector<16x32xf32>
    %15 = vector.shape_cast %14 : vector<16x32xf32> to vector<1x16x32xf32>
    %16 = arith.truncf %15 : vector<1x16x32xf32> to vector<1x16x32xbf16>
    %17 = vector.extract_strided_slice %11 {offsets = [0, 128], sizes = [16, 32], strides = [1, 1]} : vector<16x384xf32> to vector<16x32xf32>
    %18 = vector.shape_cast %17 : vector<16x32xf32> to vector<1x16x32xf32>
    %19 = arith.truncf %18 : vector<1x16x32xf32> to vector<1x16x32xbf16>
    %20 = vector.extract_strided_slice %11 {offsets = [0, 256], sizes = [16, 32], strides = [1, 1]} : vector<16x384xf32> to vector<16x32xf32>
    %21 = vector.shape_cast %20 : vector<16x32xf32> to vector<1x16x32xf32>
    %22 = arith.truncf %21 : vector<1x16x32xf32> to vector<1x16x32xbf16>
    "tpu.trace_start"() <{level = 10 : i32, message = "bqd,bkd->bqk"}> : () -> ()
    %cst_12 = arith.constant dense<0.000000e+00> : vector<1x16x16xf32>
    %23 = tpu.matmul %16, %19, %cst_12 {dimension_numbers = #tpu.dot_dimension_numbers<[2], [2], [1], [1], [0, 0, 0, 1, 1, 1], [0], [0]>} : vector<1x16x32xbf16>, vector<1x16x32xbf16>, vector<1x16x16xf32> -> vector<1x16x16xf32>
    "tpu.trace_stop"() : () -> ()
    %cst_13 = arith.constant 0.176776692 : f32
    %24 = vector.broadcast %cst_13 : f32 to vector<1x16x16xf32>
    %25 = arith.mulf %23, %24 : vector<1x16x16xf32>
    %26 = vector.broadcast %12 : vector<1x1x16xf32> to vector<1x16x16xf32>
    %27 = arith.addf %25, %26 : vector<1x16x16xf32>
    %cst_14 = arith.constant dense<0xFF800000> : vector<1x16xf32>
    %28 = vector.multi_reduction <maximumf>, %27, %cst_14 [2] : vector<1x16x16xf32> to vector<1x16xf32>
    %29 = vector.shape_cast %28 : vector<1x16xf32> to vector<1x16x1xf32>
    %30 = vector.broadcast %29 : vector<1x16x1xf32> to vector<1x16x16xf32>
    %31 = arith.subf %27, %30 : vector<1x16x16xf32>
    %32 = math.exp %31 : vector<1x16x16xf32>
    %cst_15 = arith.constant dense<0.000000e+00> : vector<1x16xf32>
    %33 = vector.multi_reduction <add>, %32, %cst_15 [2] : vector<1x16x16xf32> to vector<1x16xf32>
    %34 = vector.shape_cast %33 : vector<1x16xf32> to vector<1x16x1xf32>
    %35 = tpu.reciprocal %34 {approx = true} : vector<1x16x1xf32> -> vector<1x16x1xf32>
    %36 = vector.broadcast %35 : vector<1x16x1xf32> to vector<1x16x16xf32>
    %37 = arith.mulf %32, %36 : vector<1x16x16xf32>
    %38 = arith.truncf %37 : vector<1x16x16xf32> to vector<1x16x16xbf16>
    "tpu.trace_start"() <{level = 10 : i32, message = "bqk,bkd->bqd"}> : () -> ()
    %cst_16 = arith.constant dense<0.000000e+00> : vector<1x16x32xf32>
    %39 = tpu.matmul %38, %22, %cst_16 {dimension_numbers = #tpu.dot_dimension_numbers<[2], [1], [1], [2], [0, 0, 0, 1, 1, 2], [0], [0]>} : vector<1x16x16xbf16>, vector<1x16x32xbf16>, vector<1x16x32xf32> -> vector<1x16x32xf32>
    "tpu.trace_stop"() : () -> ()
    %40 = vector.shape_cast %39 : vector<1x16x32xf32> to vector<16x32xf32>
    %41 = arith.truncf %40 : vector<16x32xf32> to vector<16x32xbf16>
    %c0_17 = arith.constant 0 : index
    %c0_18 = arith.constant 0 : index
    %c0_19 = arith.constant 0 : index
    %42 = vector.load %arg7[%c0_17, %c0_18, %c0_19] : memref<1x128x128xbf16, #tpu.memory_space<vmem>>, vector<1x32x128xbf16>
    %43 = vector.shape_cast %42 : vector<1x32x128xbf16> to vector<32x128xbf16>
    %cst_20 = arith.constant dense<0.000000e+00> : vector<16x128xf32>
    %44 = tpu.matmul %41, %43, %cst_20 {dimension_numbers = #tpu.dot_dimension_numbers<[1], [0], [0], [1], [0, 0, 1, 1], [], []>} : vector<16x32xbf16>, vector<32x128xbf16>, vector<16x128xf32> -> vector<16x128xf32>
    %45 = arith.addf %13, %44 : vector<16x128xf32>
    %46 = vector.extract_strided_slice %11 {offsets = [0, 32], sizes = [16, 32], strides = [1, 1]} : vector<16x384xf32> to vector<16x32xf32>
    %47 = vector.shape_cast %46 : vector<16x32xf32> to vector<1x16x32xf32>
    %48 = arith.truncf %47 : vector<1x16x32xf32> to vector<1x16x32xbf16>
    %49 = vector.extract_strided_slice %11 {offsets = [0, 160], sizes = [16, 32], strides = [1, 1]} : vector<16x384xf32> to vector<16x32xf32>
    %50 = vector.shape_cast %49 : vector<16x32xf32> to vector<1x16x32xf32>
    %51 = arith.truncf %50 : vector<1x16x32xf32> to vector<1x16x32xbf16>
    %52 = vector.extract_strided_slice %11 {offsets = [0, 288], sizes = [16, 32], strides = [1, 1]} : vector<16x384xf32> to vector<16x32xf32>
    %53 = vector.shape_cast %52 : vector<16x32xf32> to vector<1x16x32xf32>
    %54 = arith.truncf %53 : vector<1x16x32xf32> to vector<1x16x32xbf16>
    "tpu.trace_start"() <{level = 10 : i32, message = "bqd,bkd->bqk"}> : () -> ()
    %cst_21 = arith.constant dense<0.000000e+00> : vector<1x16x16xf32>
    %55 = tpu.matmul %48, %51, %cst_21 {dimension_numbers = #tpu.dot_dimension_numbers<[2], [2], [1], [1], [0, 0, 0, 1, 1, 1], [0], [0]>} : vector<1x16x32xbf16>, vector<1x16x32xbf16>, vector<1x16x16xf32> -> vector<1x16x16xf32>
    "tpu.trace_stop"() : () -> ()
    %cst_22 = arith.constant 0.176776692 : f32
    %56 = vector.broadcast %cst_22 : f32 to vector<1x16x16xf32>
    %57 = arith.mulf %55, %56 : vector<1x16x16xf32>
    %58 = vector.broadcast %12 : vector<1x1x16xf32> to vector<1x16x16xf32>
    %59 = arith.addf %57, %58 : vector<1x16x16xf32>
    %cst_23 = arith.constant dense<0xFF800000> : vector<1x16xf32>
    %60 = vector.multi_reduction <maximumf>, %59, %cst_23 [2] : vector<1x16x16xf32> to vector<1x16xf32>
    %61 = vector.shape_cast %60 : vector<1x16xf32> to vector<1x16x1xf32>
    %62 = vector.broadcast %61 : vector<1x16x1xf32> to vector<1x16x16xf32>
    %63 = arith.subf %59, %62 : vector<1x16x16xf32>
    %64 = math.exp %63 : vector<1x16x16xf32>
    %cst_24 = arith.constant dense<0.000000e+00> : vector<1x16xf32>
    %65 = vector.multi_reduction <add>, %64, %cst_24 [2] : vector<1x16x16xf32> to vector<1x16xf32>
    %66 = vector.shape_cast %65 : vector<1x16xf32> to vector<1x16x1xf32>
    %67 = tpu.reciprocal %66 {approx = true} : vector<1x16x1xf32> -> vector<1x16x1xf32>
    %68 = vector.broadcast %67 : vector<1x16x1xf32> to vector<1x16x16xf32>
    %69 = arith.mulf %64, %68 : vector<1x16x16xf32>
    %70 = arith.truncf %69 : vector<1x16x16xf32> to vector<1x16x16xbf16>
    "tpu.trace_start"() <{level = 10 : i32, message = "bqk,bkd->bqd"}> : () -> ()
    %cst_25 = arith.constant dense<0.000000e+00> : vector<1x16x32xf32>
    %71 = tpu.matmul %70, %54, %cst_25 {dimension_numbers = #tpu.dot_dimension_numbers<[2], [1], [1], [2], [0, 0, 0, 1, 1, 2], [0], [0]>} : vector<1x16x16xbf16>, vector<1x16x32xbf16>, vector<1x16x32xf32> -> vector<1x16x32xf32>
    "tpu.trace_stop"() : () -> ()
    %72 = vector.shape_cast %71 : vector<1x16x32xf32> to vector<16x32xf32>
    %73 = arith.truncf %72 : vector<16x32xf32> to vector<16x32xbf16>
    %c0_26 = arith.constant 0 : index
    %c32 = arith.constant 32 : index
    %c0_27 = arith.constant 0 : index
    %74 = vector.load %arg7[%c0_26, %c32, %c0_27] : memref<1x128x128xbf16, #tpu.memory_space<vmem>>, vector<1x32x128xbf16>
    %75 = vector.shape_cast %74 : vector<1x32x128xbf16> to vector<32x128xbf16>
    %cst_28 = arith.constant dense<0.000000e+00> : vector<16x128xf32>
    %76 = tpu.matmul %73, %75, %cst_28 {dimension_numbers = #tpu.dot_dimension_numbers<[1], [0], [0], [1], [0, 0, 1, 1], [], []>} : vector<16x32xbf16>, vector<32x128xbf16>, vector<16x128xf32> -> vector<16x128xf32>
    %77 = arith.addf %45, %76 : vector<16x128xf32>
    %78 = vector.extract_strided_slice %11 {offsets = [0, 64], sizes = [16, 32], strides = [1, 1]} : vector<16x384xf32> to vector<16x32xf32>
    %79 = vector.shape_cast %78 : vector<16x32xf32> to vector<1x16x32xf32>
    %80 = arith.truncf %79 : vector<1x16x32xf32> to vector<1x16x32xbf16>
    %81 = vector.extract_strided_slice %11 {offsets = [0, 192], sizes = [16, 32], strides = [1, 1]} : vector<16x384xf32> to vector<16x32xf32>
    %82 = vector.shape_cast %81 : vector<16x32xf32> to vector<1x16x32xf32>
    %83 = arith.truncf %82 : vector<1x16x32xf32> to vector<1x16x32xbf16>
    %84 = vector.extract_strided_slice %11 {offsets = [0, 320], sizes = [16, 32], strides = [1, 1]} : vector<16x384xf32> to vector<16x32xf32>
    %85 = vector.shape_cast %84 : vector<16x32xf32> to vector<1x16x32xf32>
    %86 = arith.truncf %85 : vector<1x16x32xf32> to vector<1x16x32xbf16>
    "tpu.trace_start"() <{level = 10 : i32, message = "bqd,bkd->bqk"}> : () -> ()
    %cst_29 = arith.constant dense<0.000000e+00> : vector<1x16x16xf32>
    %87 = tpu.matmul %80, %83, %cst_29 {dimension_numbers = #tpu.dot_dimension_numbers<[2], [2], [1], [1], [0, 0, 0, 1, 1, 1], [0], [0]>} : vector<1x16x32xbf16>, vector<1x16x32xbf16>, vector<1x16x16xf32> -> vector<1x16x16xf32>
    "tpu.trace_stop"() : () -> ()
    %cst_30 = arith.constant 0.176776692 : f32
    %88 = vector.broadcast %cst_30 : f32 to vector<1x16x16xf32>
    %89 = arith.mulf %87, %88 : vector<1x16x16xf32>
    %90 = vector.broadcast %12 : vector<1x1x16xf32> to vector<1x16x16xf32>
    %91 = arith.addf %89, %90 : vector<1x16x16xf32>
    %cst_31 = arith.constant dense<0xFF800000> : vector<1x16xf32>
    %92 = vector.multi_reduction <maximumf>, %91, %cst_31 [2] : vector<1x16x16xf32> to vector<1x16xf32>
    %93 = vector.shape_cast %92 : vector<1x16xf32> to vector<1x16x1xf32>
    %94 = vector.broadcast %93 : vector<1x16x1xf32> to vector<1x16x16xf32>
    %95 = arith.subf %91, %94 : vector<1x16x16xf32>
    %96 = math.exp %95 : vector<1x16x16xf32>
    %cst_32 = arith.constant dense<0.000000e+00> : vector<1x16xf32>
    %97 = vector.multi_reduction <add>, %96, %cst_32 [2] : vector<1x16x16xf32> to vector<1x16xf32>
    %98 = vector.shape_cast %97 : vector<1x16xf32> to vector<1x16x1xf32>
    %99 = tpu.reciprocal %98 {approx = true} : vector<1x16x1xf32> -> vector<1x16x1xf32>
    %100 = vector.broadcast %99 : vector<1x16x1xf32> to vector<1x16x16xf32>
    %101 = arith.mulf %96, %100 : vector<1x16x16xf32>
    %102 = arith.truncf %101 : vector<1x16x16xf32> to vector<1x16x16xbf16>
    "tpu.trace_start"() <{level = 10 : i32, message = "bqk,bkd->bqd"}> : () -> ()
    %cst_33 = arith.constant dense<0.000000e+00> : vector<1x16x32xf32>
    %103 = tpu.matmul %102, %86, %cst_33 {dimension_numbers = #tpu.dot_dimension_numbers<[2], [1], [1], [2], [0, 0, 0, 1, 1, 2], [0], [0]>} : vector<1x16x16xbf16>, vector<1x16x32xbf16>, vector<1x16x32xf32> -> vector<1x16x32xf32>
    "tpu.trace_stop"() : () -> ()
    %104 = vector.shape_cast %103 : vector<1x16x32xf32> to vector<16x32xf32>
    %105 = arith.truncf %104 : vector<16x32xf32> to vector<16x32xbf16>
    %c0_34 = arith.constant 0 : index
    %c64 = arith.constant 64 : index
    %c0_35 = arith.constant 0 : index
    %106 = vector.load %arg7[%c0_34, %c64, %c0_35] : memref<1x128x128xbf16, #tpu.memory_space<vmem>>, vector<1x32x128xbf16>
    %107 = vector.shape_cast %106 : vector<1x32x128xbf16> to vector<32x128xbf16>
    %cst_36 = arith.constant dense<0.000000e+00> : vector<16x128xf32>
    %108 = tpu.matmul %105, %107, %cst_36 {dimension_numbers = #tpu.dot_dimension_numbers<[1], [0], [0], [1], [0, 0, 1, 1], [], []>} : vector<16x32xbf16>, vector<32x128xbf16>, vector<16x128xf32> -> vector<16x128xf32>
    %109 = arith.addf %77, %108 : vector<16x128xf32>
    %110 = vector.extract_strided_slice %11 {offsets = [0, 96], sizes = [16, 32], strides = [1, 1]} : vector<16x384xf32> to vector<16x32xf32>
    %111 = vector.shape_cast %110 : vector<16x32xf32> to vector<1x16x32xf32>
    %112 = arith.truncf %111 : vector<1x16x32xf32> to vector<1x16x32xbf16>
    %113 = vector.extract_strided_slice %11 {offsets = [0, 224], sizes = [16, 32], strides = [1, 1]} : vector<16x384xf32> to vector<16x32xf32>
    %114 = vector.shape_cast %113 : vector<16x32xf32> to vector<1x16x32xf32>
    %115 = arith.truncf %114 : vector<1x16x32xf32> to vector<1x16x32xbf16>
    %116 = vector.extract_strided_slice %11 {offsets = [0, 352], sizes = [16, 32], strides = [1, 1]} : vector<16x384xf32> to vector<16x32xf32>
    %117 = vector.shape_cast %116 : vector<16x32xf32> to vector<1x16x32xf32>
    %118 = arith.truncf %117 : vector<1x16x32xf32> to vector<1x16x32xbf16>
    "tpu.trace_start"() <{level = 10 : i32, message = "bqd,bkd->bqk"}> : () -> ()
    %cst_37 = arith.constant dense<0.000000e+00> : vector<1x16x16xf32>
    %119 = tpu.matmul %112, %115, %cst_37 {dimension_numbers = #tpu.dot_dimension_numbers<[2], [2], [1], [1], [0, 0, 0, 1, 1, 1], [0], [0]>} : vector<1x16x32xbf16>, vector<1x16x32xbf16>, vector<1x16x16xf32> -> vector<1x16x16xf32>
    "tpu.trace_stop"() : () -> ()
    %cst_38 = arith.constant 0.176776692 : f32
    %120 = vector.broadcast %cst_38 : f32 to vector<1x16x16xf32>
    %121 = arith.mulf %119, %120 : vector<1x16x16xf32>
    %122 = vector.broadcast %12 : vector<1x1x16xf32> to vector<1x16x16xf32>
    %123 = arith.addf %121, %122 : vector<1x16x16xf32>
    %cst_39 = arith.constant dense<0xFF800000> : vector<1x16xf32>
    %124 = vector.multi_reduction <maximumf>, %123, %cst_39 [2] : vector<1x16x16xf32> to vector<1x16xf32>
    %125 = vector.shape_cast %124 : vector<1x16xf32> to vector<1x16x1xf32>
    %126 = vector.broadcast %125 : vector<1x16x1xf32> to vector<1x16x16xf32>
    %127 = arith.subf %123, %126 : vector<1x16x16xf32>
    %128 = math.exp %127 : vector<1x16x16xf32>
    %cst_40 = arith.constant dense<0.000000e+00> : vector<1x16xf32>
    %129 = vector.multi_reduction <add>, %128, %cst_40 [2] : vector<1x16x16xf32> to vector<1x16xf32>
    %130 = vector.shape_cast %129 : vector<1x16xf32> to vector<1x16x1xf32>
    %131 = tpu.reciprocal %130 {approx = true} : vector<1x16x1xf32> -> vector<1x16x1xf32>
    %132 = vector.broadcast %131 : vector<1x16x1xf32> to vector<1x16x16xf32>
    %133 = arith.mulf %128, %132 : vector<1x16x16xf32>
    %134 = arith.truncf %133 : vector<1x16x16xf32> to vector<1x16x16xbf16>
    "tpu.trace_start"() <{level = 10 : i32, message = "bqk,bkd->bqd"}> : () -> ()
    %cst_41 = arith.constant dense<0.000000e+00> : vector<1x16x32xf32>
    %135 = tpu.matmul %134, %118, %cst_41 {dimension_numbers = #tpu.dot_dimension_numbers<[2], [1], [1], [2], [0, 0, 0, 1, 1, 2], [0], [0]>} : vector<1x16x16xbf16>, vector<1x16x32xbf16>, vector<1x16x32xf32> -> vector<1x16x32xf32>
    "tpu.trace_stop"() : () -> ()
    %136 = vector.shape_cast %135 : vector<1x16x32xf32> to vector<16x32xf32>
    %137 = arith.truncf %136 : vector<16x32xf32> to vector<16x32xbf16>
    %c0_42 = arith.constant 0 : index
    %c96 = arith.constant 96 : index
    %c0_43 = arith.constant 0 : index
    %138 = vector.load %arg7[%c0_42, %c96, %c0_43] : memref<1x128x128xbf16, #tpu.memory_space<vmem>>, vector<1x32x128xbf16>
    %139 = vector.shape_cast %138 : vector<1x32x128xbf16> to vector<32x128xbf16>
    %cst_44 = arith.constant dense<0.000000e+00> : vector<16x128xf32>
    %140 = tpu.matmul %137, %139, %cst_44 {dimension_numbers = #tpu.dot_dimension_numbers<[1], [0], [0], [1], [0, 0, 1, 1], [], []>} : vector<16x32xbf16>, vector<32x128xbf16>, vector<16x128xf32> -> vector<16x128xf32>
    %141 = arith.addf %109, %140 : vector<16x128xf32>
    %c0_45 = arith.constant 0 : index
    %c0_46 = arith.constant 0 : index
    %c0_47 = arith.constant 0 : index
    %142 = vector.load %arg8[%c0_45, %c0_46, %c0_47] : memref<1x1x128xf32, #tpu.memory_space<vmem>>, vector<1x1x128xf32>
    %143 = vector.shape_cast %142 : vector<1x1x128xf32> to vector<1x128xf32>
    %144 = vector.broadcast %143 : vector<1x128xf32> to vector<16x128xf32>
    %145 = arith.addf %141, %144 : vector<16x128xf32>
    %146 = arith.addf %3, %145 : vector<16x128xf32>
    %c0_48 = arith.constant 0 : index
    %c0_49 = arith.constant 0 : index
    %c0_50 = arith.constant 0 : index
    %147 = vector.load %arg9[%c0_48, %c0_49, %c0_50] : memref<1x1x128xf32, #tpu.memory_space<vmem>>, vector<1x1x128xf32>
    %148 = vector.shape_cast %147 : vector<1x1x128xf32> to vector<1x128xf32>
    %c0_51 = arith.constant 0 : index
    %c0_52 = arith.constant 0 : index
    %c0_53 = arith.constant 0 : index
    %149 = vector.load %arg10[%c0_51, %c0_52, %c0_53] : memref<1x1x128xf32, #tpu.memory_space<vmem>>, vector<1x1x128xf32>
    %150 = vector.shape_cast %149 : vector<1x1x128xf32> to vector<1x128xf32>
    %cst_54 = arith.constant dense<0.000000e+00> : vector<16xf32>
    %151 = vector.multi_reduction <add>, %146, %cst_54 [1] : vector<16x128xf32> to vector<16xf32>
    %152 = vector.shape_cast %151 : vector<16xf32> to vector<16x1xf32>
    %cst_55 = arith.constant 1.280000e+02 : f32
    %153 = vector.broadcast %cst_55 : f32 to vector<16x1xf32>
    %154 = arith.divf %152, %153 : vector<16x1xf32>
    %155 = vector.broadcast %154 : vector<16x1xf32> to vector<16x128xf32>
    %156 = arith.subf %146, %155 : vector<16x128xf32>
    %157 = arith.mulf %156, %156 : vector<16x128xf32>
    %cst_56 = arith.constant dense<0.000000e+00> : vector<16xf32>
    %158 = vector.multi_reduction <add>, %157, %cst_56 [1] : vector<16x128xf32> to vector<16xf32>
    %159 = vector.shape_cast %158 : vector<16xf32> to vector<16x1xf32>
    %cst_57 = arith.constant 1.280000e+02 : f32
    %160 = vector.broadcast %cst_57 : f32 to vector<16x1xf32>
    %161 = arith.divf %159, %160 : vector<16x1xf32>
    %162 = vector.broadcast %154 : vector<16x1xf32> to vector<16x128xf32>
    %163 = arith.subf %146, %162 : vector<16x128xf32>
    %cst_58 = arith.constant 9.99999996E-13 : f32
    %164 = vector.broadcast %cst_58 : f32 to vector<16x1xf32>
    %165 = arith.addf %161, %164 : vector<16x1xf32>
    %166 = math.rsqrt %165 : vector<16x1xf32>
    %167 = vector.broadcast %166 : vector<16x1xf32> to vector<16x128xf32>
    %168 = arith.mulf %163, %167 : vector<16x128xf32>
    %169 = vector.broadcast %148 : vector<1x128xf32> to vector<16x128xf32>
    %170 = arith.mulf %168, %169 : vector<16x128xf32>
    %171 = vector.broadcast %150 : vector<1x128xf32> to vector<16x128xf32>
    %172 = arith.addf %170, %171 : vector<16x128xf32>
    %173 = arith.truncf %172 : vector<16x128xf32> to vector<16x128xbf16>
    %c0_59 = arith.constant 0 : index
    %c0_60 = arith.constant 0 : index
    %c0_61 = arith.constant 0 : index
    %174 = vector.load %arg11[%c0_59, %c0_60, %c0_61] : memref<1x128x512xbf16, #tpu.memory_space<vmem>>, vector<1x128x512xbf16>
    %175 = vector.shape_cast %174 : vector<1x128x512xbf16> to vector<128x512xbf16>
    %cst_62 = arith.constant dense<0.000000e+00> : vector<16x512xf32>
    %176 = tpu.matmul %173, %175, %cst_62 {dimension_numbers = #tpu.dot_dimension_numbers<[1], [0], [0], [1], [0, 0, 1, 1], [], []>} : vector<16x128xbf16>, vector<128x512xbf16>, vector<16x512xf32> -> vector<16x512xf32>
    %c0_63 = arith.constant 0 : index
    %c0_64 = arith.constant 0 : index
    %c0_65 = arith.constant 0 : index
    %177 = vector.load %arg12[%c0_63, %c0_64, %c0_65] : memref<1x1x512xf32, #tpu.memory_space<vmem>>, vector<1x1x512xf32>
    %178 = vector.shape_cast %177 : vector<1x1x512xf32> to vector<1x512xf32>
    %179 = vector.broadcast %178 : vector<1x512xf32> to vector<16x512xf32>
    %180 = arith.addf %176, %179 : vector<16x512xf32>
    %181 = arith.mulf %180, %180 : vector<16x512xf32>
    %182 = arith.mulf %180, %181 : vector<16x512xf32>
    %cst_66 = arith.constant 4.471500e-02 : f32
    %183 = vector.broadcast %cst_66 : f32 to vector<16x512xf32>
    %184 = arith.mulf %183, %182 : vector<16x512xf32>
    %185 = arith.addf %180, %184 : vector<16x512xf32>
    %cst_67 = arith.constant 0.797884583 : f32
    %186 = vector.broadcast %cst_67 : f32 to vector<16x512xf32>
    %187 = arith.mulf %186, %185 : vector<16x512xf32>
    %188 = math.tanh %187 : vector<16x512xf32>
    %cst_68 = arith.constant 1.000000e+00 : f32
    %189 = vector.broadcast %cst_68 : f32 to vector<16x512xf32>
    %190 = arith.addf %189, %188 : vector<16x512xf32>
    %cst_69 = arith.constant 5.000000e-01 : f32
    %191 = vector.broadcast %cst_69 : f32 to vector<16x512xf32>
    %192 = arith.mulf %191, %190 : vector<16x512xf32>
    %193 = arith.mulf %180, %192 : vector<16x512xf32>
    %194 = arith.truncf %193 : vector<16x512xf32> to vector<16x512xbf16>
    %c0_70 = arith.constant 0 : index
    %c0_71 = arith.constant 0 : index
    %c0_72 = arith.constant 0 : index
    %195 = vector.load %arg13[%c0_70, %c0_71, %c0_72] : memref<1x512x128xbf16, #tpu.memory_space<vmem>>, vector<1x512x128xbf16>
    %196 = vector.shape_cast %195 : vector<1x512x128xbf16> to vector<512x128xbf16>
    %cst_73 = arith.constant dense<0.000000e+00> : vector<16x128xf32>
    %197 = tpu.matmul %194, %196, %cst_73 {dimension_numbers = #tpu.dot_dimension_numbers<[1], [0], [0], [1], [0, 0, 1, 1], [], []>} : vector<16x512xbf16>, vector<512x128xbf16>, vector<16x128xf32> -> vector<16x128xf32>
    %c0_74 = arith.constant 0 : index
    %c0_75 = arith.constant 0 : index
    %c0_76 = arith.constant 0 : index
    %198 = vector.load %arg14[%c0_74, %c0_75, %c0_76] : memref<1x1x128xf32, #tpu.memory_space<vmem>>, vector<1x1x128xf32>
    %199 = vector.shape_cast %198 : vector<1x1x128xf32> to vector<1x128xf32>
    %200 = vector.broadcast %199 : vector<1x128xf32> to vector<16x128xf32>
    %201 = arith.addf %197, %200 : vector<16x128xf32>
    %202 = arith.addf %172, %201 : vector<16x128xf32>
    %c0_77 = arith.constant 0 : index
    %c0_78 = arith.constant 0 : index
    %c0_79 = arith.constant 0 : index
    %203 = vector.load %arg15[%c0_77, %c0_78, %c0_79] : memref<1x1x128xf32, #tpu.memory_space<vmem>>, vector<1x1x128xf32>
    %204 = vector.shape_cast %203 : vector<1x1x128xf32> to vector<1x128xf32>
    %c0_80 = arith.constant 0 : index
    %c0_81 = arith.constant 0 : index
    %c0_82 = arith.constant 0 : index
    %205 = vector.load %arg16[%c0_80, %c0_81, %c0_82] : memref<1x1x128xf32, #tpu.memory_space<vmem>>, vector<1x1x128xf32>
    %206 = vector.shape_cast %205 : vector<1x1x128xf32> to vector<1x128xf32>
    %cst_83 = arith.constant dense<0.000000e+00> : vector<16xf32>
    %207 = vector.multi_reduction <add>, %202, %cst_83 [1] : vector<16x128xf32> to vector<16xf32>
    %208 = vector.shape_cast %207 : vector<16xf32> to vector<16x1xf32>
    %cst_84 = arith.constant 1.280000e+02 : f32
    %209 = vector.broadcast %cst_84 : f32 to vector<16x1xf32>
    %210 = arith.divf %208, %209 : vector<16x1xf32>
    %211 = vector.broadcast %210 : vector<16x1xf32> to vector<16x128xf32>
    %212 = arith.subf %202, %211 : vector<16x128xf32>
    %213 = arith.mulf %212, %212 : vector<16x128xf32>
    %cst_85 = arith.constant dense<0.000000e+00> : vector<16xf32>
    %214 = vector.multi_reduction <add>, %213, %cst_85 [1] : vector<16x128xf32> to vector<16xf32>
    %215 = vector.shape_cast %214 : vector<16xf32> to vector<16x1xf32>
    %cst_86 = arith.constant 1.280000e+02 : f32
    %216 = vector.broadcast %cst_86 : f32 to vector<16x1xf32>
    %217 = arith.divf %215, %216 : vector<16x1xf32>
    %218 = vector.broadcast %210 : vector<16x1xf32> to vector<16x128xf32>
    %219 = arith.subf %202, %218 : vector<16x128xf32>
    %cst_87 = arith.constant 9.99999996E-13 : f32
    %220 = vector.broadcast %cst_87 : f32 to vector<16x1xf32>
    %221 = arith.addf %217, %220 : vector<16x1xf32>
    %222 = math.rsqrt %221 : vector<16x1xf32>
    %223 = vector.broadcast %222 : vector<16x1xf32> to vector<16x128xf32>
    %224 = arith.mulf %219, %223 : vector<16x128xf32>
    %225 = vector.broadcast %204 : vector<1x128xf32> to vector<16x128xf32>
    %226 = arith.mulf %224, %225 : vector<16x128xf32>
    %227 = vector.broadcast %206 : vector<1x128xf32> to vector<16x128xf32>
    %228 = arith.addf %226, %227 : vector<16x128xf32>
    %c0_88 = arith.constant 0 : index
    %c0_89 = arith.constant 0 : index
    %229 = vector.load %arg18[%c0_88, %c0_89] : memref<16x128xf32, #tpu.memory_space<vmem>>, vector<16x128xf32>
    tpu.vector_store %arg18[%c0_88, %c0_89], %228 {strides = array<i32>} : memref<16x128xf32, #tpu.memory_space<vmem>>, vector<16x128xf32>,
    %c1_i32 = arith.constant 1 : i32
    %230 = arith.cmpi eq, %arg1, %c1_i32 : i32
    %231 = arith.extui %230 : i1 to i32
    %c0_i32_90 = arith.constant 0 : i32
    %232 = arith.cmpi ne, %231, %c0_i32_90 : i32
    scf.if %232 {
      %c1_i32_91 = arith.constant 1 : i32
      %233 = arith.muli %arg0, %c1_i32_91 : i32
      %c0_i32_92 = arith.constant 0 : i32
      %234 = arith.addi %233, %c0_i32_92 : i32
      %235 = arith.index_cast %234 : i32 to index
      %c0_93 = arith.constant 0 : index
      %236 = memref.load %arg2[%235, %c0_93] : memref<2x5xi32, #tpu.memory_space<smem>>
      %c0_i32_94 = arith.constant 0 : i32
      %237 = arith.addi %c0_i32_94, %236 : i32
      %238 = arith.index_cast %237 : i32 to index
      %c0_95 = arith.constant 0 : index
      %239 = vector.load %arg18[%238, %c0_95] : memref<16x128xf32, #tpu.memory_space<vmem>>, vector<1x128xf32>
      %240 = arith.index_cast %234 : i32 to index
      %c1 = arith.constant 1 : index
      %241 = memref.load %arg2[%240, %c1] : memref<2x5xi32, #tpu.memory_space<smem>>
      %c0_i32_96 = arith.constant 0 : i32
      %242 = arith.addi %c0_i32_96, %241 : i32
      %243 = arith.index_cast %242 : i32 to index
      %c0_97 = arith.constant 0 : index
      %244 = vector.load %arg18[%243, %c0_97] : memref<16x128xf32, #tpu.memory_space<vmem>>, vector<1x128xf32>
      %245 = arith.addf %239, %244 : vector<1x128xf32>
      %246 = arith.index_cast %234 : i32 to index
      %c2 = arith.constant 2 : index
      %247 = memref.load %arg2[%246, %c2] : memref<2x5xi32, #tpu.memory_space<smem>>
      %c0_i32_98 = arith.constant 0 : i32
      %248 = arith.addi %c0_i32_98, %247 : i32
      %249 = arith.index_cast %248 : i32 to index
      %c0_99 = arith.constant 0 : index
      %250 = vector.load %arg18[%249, %c0_99] : memref<16x128xf32, #tpu.memory_space<vmem>>, vector<1x128xf32>
      %251 = arith.index_cast %234 : i32 to index
      %c3 = arith.constant 3 : index
      %252 = memref.load %arg2[%251, %c3] : memref<2x5xi32, #tpu.memory_space<smem>>
      %c0_i32_100 = arith.constant 0 : i32
      %253 = arith.addi %c0_i32_100, %252 : i32
      %254 = arith.index_cast %253 : i32 to index
      %c0_101 = arith.constant 0 : index
      %255 = vector.load %arg18[%254, %c0_101] : memref<16x128xf32, #tpu.memory_space<vmem>>, vector<1x128xf32>
      %256 = arith.addf %250, %255 : vector<1x128xf32>
      %257 = arith.index_cast %234 : i32 to index
      %c4 = arith.constant 4 : index
      %258 = memref.load %arg2[%257, %c4] : memref<2x5xi32, #tpu.memory_space<smem>>
      %c0_i32_102 = arith.constant 0 : i32
      %259 = arith.addi %c0_i32_102, %258 : i32
      %260 = arith.index_cast %259 : i32 to index
      %c0_103 = arith.constant 0 : index
      %261 = vector.load %arg18[%260, %c0_103] : memref<16x128xf32, #tpu.memory_space<vmem>>, vector<1x128xf32>
      %262 = tpu.concatenate %245, %256, %261 in 0 : vector<1x128xf32>, vector<1x128xf32>, vector<1x128xf32> -> vector<3x128xf32>
      %c0_104 = arith.constant 0 : index
      %c0_105 = arith.constant 0 : index
      %c0_106 = arith.constant 0 : index
      %263 = vector.load %arg17[%c0_104, %c0_105, %c0_106] : memref<1x3x128xf32, #tpu.memory_space<vmem>>, vector<1x3x128xf32>
      %264 = vector.shape_cast %263 : vector<1x3x128xf32> to vector<3x128xf32>
      %265 = vector.shape_cast %262 : vector<3x128xf32> to vector<1x3x128xf32>
      tpu.vector_store %arg17[%c0_104, %c0_105, %c0_106], %265 {strides = array<i32>} : memref<1x3x128xf32, #tpu.memory_space<vmem>>, vector<1x3x128xf32>,
    } else {
    }
    return
  }
  func.func @transform_0(%arg0: i32, %arg1: i32, %arg2: memref<2x5xi32, #tpu.memory_space<smem>>) -> (i32, i32) {
    %c0_i32 = arith.constant 0 : i32
    %c0_i32_0 = arith.constant 0 : i32
    return %arg0, %c0_i32 : i32, i32
  }
  func.func @transform_1(%arg0: i32, %arg1: i32, %arg2: memref<2x5xi32, #tpu.memory_space<smem>>) -> (i32, i32, i32) {
    %c0_i32 = arith.constant 0 : i32
    %c0_i32_0 = arith.constant 0 : i32
    %c0_i32_1 = arith.constant 0 : i32
    return %arg0, %c0_i32, %c0_i32_0 : i32, i32, i32
  }
  func.func @transform_2(%arg0: i32, %arg1: i32, %arg2: memref<2x5xi32, #tpu.memory_space<smem>>) -> (i32, i32, i32) {
    %c0_i32 = arith.constant 0 : i32
    %c0_i32_0 = arith.constant 0 : i32
    %c0_i32_1 = arith.constant 0 : i32
    return %arg1, %c0_i32, %c0_i32_0 : i32, i32, i32
  }
  func.func @transform_3(%arg0: i32, %arg1: i32, %arg2: memref<2x5xi32, #tpu.memory_space<smem>>) -> (i32, i32, i32) {
    %c0_i32 = arith.constant 0 : i32
    %c0_i32_0 = arith.constant 0 : i32
    %c0_i32_1 = arith.constant 0 : i32
    return %arg1, %c0_i32, %c0_i32_0 : i32, i32, i32
  }
  func.func @transform_4(%arg0: i32, %arg1: i32, %arg2: memref<2x5xi32, #tpu.memory_space<smem>>) -> (i32, i32, i32) {
    %c0_i32 = arith.constant 0 : i32
    %c0_i32_0 = arith.constant 0 : i32
    %c0_i32_1 = arith.constant 0 : i32
    return %arg1, %c0_i32, %c0_i32_0 : i32, i32, i32
  }
  func.func @transform_5(%arg0: i32, %arg1: i32, %arg2: memref<2x5xi32, #tpu.memory_space<smem>>) -> (i32, i32, i32) {
    %c0_i32 = arith.constant 0 : i32
    %c0_i32_0 = arith.constant 0 : i32
    %c0_i32_1 = arith.constant 0 : i32
    return %arg1, %c0_i32, %c0_i32_0 : i32, i32, i32
  }
  func.func @transform_6(%arg0: i32, %arg1: i32, %arg2: memref<2x5xi32, #tpu.memory_space<smem>>) -> (i32, i32, i32) {
    %c0_i32 = arith.constant 0 : i32
    %c0_i32_0 = arith.constant 0 : i32
    %c0_i32_1 = arith.constant 0 : i32
    return %arg1, %c0_i32, %c0_i32_0 : i32, i32, i32
  }
  func.func @transform_7(%arg0: i32, %arg1: i32, %arg2: memref<2x5xi32, #tpu.memory_space<smem>>) -> (i32, i32, i32) {
    %c0_i32 = arith.constant 0 : i32
    %c0_i32_0 = arith.constant 0 : i32
    %c0_i32_1 = arith.constant 0 : i32
    return %arg1, %c0_i32, %c0_i32_0 : i32, i32, i32
  }
  func.func @transform_8(%arg0: i32, %arg1: i32, %arg2: memref<2x5xi32, #tpu.memory_space<smem>>) -> (i32, i32, i32) {
    %c0_i32 = arith.constant 0 : i32
    %c0_i32_0 = arith.constant 0 : i32
    %c0_i32_1 = arith.constant 0 : i32
    return %arg1, %c0_i32, %c0_i32_0 : i32, i32, i32
  }
  func.func @transform_9(%arg0: i32, %arg1: i32, %arg2: memref<2x5xi32, #tpu.memory_space<smem>>) -> (i32, i32, i32) {
    %c0_i32 = arith.constant 0 : i32
    %c0_i32_0 = arith.constant 0 : i32
    %c0_i32_1 = arith.constant 0 : i32
    return %arg1, %c0_i32, %c0_i32_0 : i32, i32, i32
  }
  func.func @transform_10(%arg0: i32, %arg1: i32, %arg2: memref<2x5xi32, #tpu.memory_space<smem>>) -> (i32, i32, i32) {
    %c0_i32 = arith.constant 0 : i32
    %c0_i32_0 = arith.constant 0 : i32
    %c0_i32_1 = arith.constant 0 : i32
    return %arg1, %c0_i32, %c0_i32_0 : i32, i32, i32
  }
  func.func @transform_11(%arg0: i32, %arg1: i32, %arg2: memref<2x5xi32, #tpu.memory_space<smem>>) -> (i32, i32, i32) {
    %c0_i32 = arith.constant 0 : i32
    %c0_i32_0 = arith.constant 0 : i32
    %c0_i32_1 = arith.constant 0 : i32
    return %arg1, %c0_i32, %c0_i32_0 : i32, i32, i32
  }
  func.func @transform_12(%arg0: i32, %arg1: i32, %arg2: memref<2x5xi32, #tpu.memory_space<smem>>) -> (i32, i32, i32) {
    %c0_i32 = arith.constant 0 : i32
    %c0_i32_0 = arith.constant 0 : i32
    %c0_i32_1 = arith.constant 0 : i32
    return %arg1, %c0_i32, %c0_i32_0 : i32, i32, i32
  }
  func.func @transform_13(%arg0: i32, %arg1: i32, %arg2: memref<2x5xi32, #tpu.memory_space<smem>>) -> (i32, i32, i32) {
    %c0_i32 = arith.constant 0 : i32
    %c0_i32_0 = arith.constant 0 : i32
    %c0_i32_1 = arith.constant 0 : i32
    return %arg1, %c0_i32, %c0_i32_0 : i32, i32, i32
  }
  func.func @transform_14(%arg0: i32, %arg1: i32, %arg2: memref<2x5xi32, #tpu.memory_space<smem>>) -> (i32, i32, i32) {
    %c0_i32 = arith.constant 0 : i32
    %c0_i32_0 = arith.constant 0 : i32
    %c0_i32_1 = arith.constant 0 : i32
    return %arg0, %c0_i32, %c0_i32_0 : i32, i32, i32
  }
}

</mosaic_0001>

<bundles_post_ra>
// kernel: feature_extraction_forward.1
= control target key start
LH: loop header
LB: loop body
LE: loop exit
PB: predicated region body
PF: predicated region fallthrough
CT: control target
= control target key end

     0   :  { %s5617_s0 = inlined_call_operand.hbm [shape: s32[2,5], index: 0, kind: input, shape index: {}]   ;;  %s5618_s1 = inlined_call_operand.hbm [shape: f32[32,128], index: 1, kind: input, shape index: {}]   ;;  %s5619_s2 = inlined_call_operand.hbm [shape: f32[2,1,16], index: 2, kind: input, shape index: {}]   ;;  %s5620_s3 = inlined_call_operand.hbm [shape: bf16[3,128,384], index: 3, kind: input, shape index: {}]   ;;  %s5621_s4 = inlined_call_operand.hbm [shape: f32[3,1,384], index: 4, kind: input, shape index: {}]   ;;  %s5622_s5 = inlined_call_operand.hbm [shape: bf16[3,128,128], index: 5, kind: input, shape index: {}]   ;;  %s5623_s6 = inlined_call_operand.hbm [shape: f32[3,1,128], index: 6, kind: input, shape index: {}]   ;;  %s5624_s7 = inlined_call_operand.hbm [shape: f32[3,1,128], index: 7, kind: input, shape index: {}]   ;;  %s5625_s8 = inlined_call_operand.hbm [shape: f32[3,1,128], index: 8, kind: input, shape index: {}]   ;;  %s5626_s9 = inlined_call_operand.hbm [shape: bf16[3,128,512], index: 9, kind: input, shape index: {}]   ;;  %s5627_s10 = inlined_call_operand.hbm [shape: f32[3,1,512], index: 10, kind: input, shape index: {}]   ;;  %s5628_s11 = inlined_call_operand.hbm [shape: bf16[3,512,128], index: 11, kind: input, shape index: {}]   ;;  %s5629_s12 = inlined_call_operand.hbm [shape: f32[3,1,128], index: 12, kind: input, shape index: {}]   ;;  %s5630_s13 = inlined_call_operand.hbm [shape: f32[3,1,128], index: 13, kind: input, shape index: {}]   ;;  %s5631_s14 = inlined_call_operand.hbm [shape: f32[3,1,128], index: 14, kind: input, shape index: {}]   ;;  %s5632_s15 = inlined_call_operand.hbm [shape: f32[2,3,128], index: 15, kind: output, shape index: {}]  }
   0x1   :  { %5669 = sst [smem:[#allocation55_spill]] %s5618_s1  ;;  %s3867_s20 = scalar_lea.hbm %s5617_s0, 32 }
   0x2   :  { %5670 = sst [smem:[#allocation56_spill]] %s5619_s2  ;;  %p3868_p0 = scmp.ne.s32.totalorder %s5617_s0, %s3867_s20 }
   0x3   :  { %5671 = sst [smem:[#allocation57_spill]] %s5620_s3  ;;  %p3871_p1 = scmp.lt.u32.totalorder %s3867_s20, %s5617_s0 }
   0x4   :  { %5672 = sst [smem:[#allocation58_spill]] %s5621_s4 }
   0x5   :  { %5673 = sst [smem:[#allocation59_spill]] %s5624_s7  ;;  %p3873_p2 = pnand %p3871_p1, %p3868_p0 }
   0x6   :  { %5674 = sst [smem:[#allocation60_spill]] %s5626_s9 }
   0x7   :  { %5675 = sst [smem:[#allocation61_spill]] %s5628_s11 }
   0x8   :  { %5676 = sst [smem:[#allocation62_spill]] %s5630_s13 }
   0x9   :  { %5677 = sst [smem:[#allocation63_spill]] %s5631_s14 }
   0xa   :  { %5678 = sst [smem:[#allocation64_spill]] %s5632_s15 }
   0xb   :  { %3876 = shalt.err (!%p3873_p2)  }
   0xc   :  { %s4427_s25 = smov [#allocation4]  }
   0xd   :  { %21 = dma.hbm_to_smem %s5617_s0, 32, %s4427_s25, [#allocation3] }
   0xe   :  { %4341 = dma.done.wait [#allocation3], 32 }
   0xf   :  { %4342 = vsyncadd [#allocation3], 4294967264 }
  0x10   :  { %23 = sfence }
  0x11   :  { %24 = vsyncpa [#allocation6], 0 }
  0x12   :  { %26 = vsyncpa [#allocation6 + $0x1], 0 }
  0x13   :  { %27 = vsyncpa [#allocation9], 0 }
  0x14   :  { %29 = vsyncpa [#allocation9 + $0x1], 0 }
  0x15   :  { %30 = vsyncpa [#allocation12], 0 }
  0x16   :  { %32 = vsyncpa [#allocation12 + $0x1], 0 }
  0x17   :  { %33 = vsyncpa [#allocation15], 0 }
  0x18   :  { %35 = vsyncpa [#allocation15 + $0x1], 0 }
  0x19   :  { %36 = vsyncpa [#allocation18], 0 }
  0x1a   :  { %38 = vsyncpa [#allocation18 + $0x1], 0 }
  0x1b   :  { %39 = vsyncpa [#allocation21], 0 }
  0x1c   :  { %41 = vsyncpa [#allocation21 + $0x1], 0 }
  0x1d   :  { %42 = vsyncpa [#allocation24], 0 }
  0x1e   :  { %44 = vsyncpa [#allocation24 + $0x1], 0 }
  0x1f   :  { %45 = vsyncpa [#allocation27], 0 }
  0x20   :  { %47 = vsyncpa [#allocation27 + $0x1], 0 }
  0x21   :  { %48 = vsyncpa [#allocation7], 0 }
  0x22   :  { %50 = vsyncpa [#allocation7 + $0x1], 0  ;;  %s4549_s0 = smov 0   ;;  %s4551_s28 = smov 0  }
  0x23   :  { %s4553_s29 = smov 0   ;;  %s4555_s30 = smov 0  }
  0x24   :  { %s4557_s16 = smov 0   ;;  %s4559_s17 = smov 0  }
  0x25   :  { %s4561_s18 = smov 0   ;;  %s4563_s19 = smov 0  }
  0x26   :  { %s4565_s20 = smov 0   ;;  %s4567_s21 = smov 0  }
  0x27   :  { %s4569_s22 = smov 0  }
  0x28 LB: > { %5679 = sst [smem:[#allocation40_spill]] %s4389_s28  ;;  %s4605_s23 = sadd.s32 4294967295, %s4425_s22   ;;  %s4425_s22 = sphi %s4569_s22, %s56_s22   ;;  %s4421_s21 = sphi %s4567_s21, %s5754_s21   ;;  %s4417_s20 = sphi %s4565_s20, %s5753_s20   ;;  %s4413_s19 = sphi %s4563_s19, %s5752_s19   ;;  %s4409_s18 = sphi %s4561_s18, %s5751_s18   ;;  %s4405_s17 = sphi %s4559_s17, %s5746_s17   ;;  %s4401_s16 = sphi %s4557_s16, %s5750_s16   ;;  %s4397_s30 = sphi %s4555_s30, %s5749_s30   ;;  %s4393_s29 = sphi %s4553_s29, %s5744_s29   ;;  %s4389_s28 = sphi %s4551_s28, %s5743_s28   ;;  %s4385_s0 = sphi %s4549_s0, %s5742_s0  }
  0x29   : > { %5680 = sst [smem:[#allocation41_spill]] %s4393_s29  ;;  %s3205_s24 = sadd.s32 4294967294, %s4425_s22  }
  0x2a   : > { %5681 = sst [smem:[#allocation42_spill]] %s4397_s30  ;;  %s65_s25 = sadd.s32 1, %s4417_s20 }
  0x2b   : > { %5682 = sst [smem:[#allocation43_spill]] %s4405_s17  ;;  %s68_s26 = sadd.s32 1, %s4421_s21 }
  0x2c   : > { %5683 = sst [smem:[#allocation44_spill]] %s4409_s18  ;;  %p66_p3 = scmp.ge.s32.totalorder %s65_s25, 2 }
  0x2d   : > { %5684 = sst [smem:[#allocation45_spill]] %s4413_s19  ;;  %s75_s27 = sadd.s32 1, %s4405_s17 }
  0x2e   : > { %5685 = sst [smem:[#allocation46_spill]] %s4605_s23  ;;  %p82_p4 = scmp.ne.s32.totalorder %s4405_s17, %s4401_s16 }
  0x2f   : > { %p83_p5 = scmp.eq.s32.totalorder %s4425_s22, 0  ;;  %s5756_s25 = smov (%p66_p3, %s65_s25), 0 }
  0x30   : > { %5686 = sst [smem:[#allocation47_spill]] %s5756_s25  ;;  %s5758_s26 = smov (!%p66_p3, %s68_s26), %s4421_s21 }
  0x31   : > { %p4622_p6 = por %p83_p5, %p82_p4  ;;  %p5640_p7 = scmp.ne.s32.totalorder %s4401_s16, %s4397_s30 }
  0x32   : > { %p70_p8 = scmp.ge.s32.totalorder %s5758_s26, 2  ;;  %p89_p9 = scmp.eq.s32.totalorder %s4605_s23, 0 }
  0x33   : > { %s5687_s15 = scalar_select %p4622_p6, 1, 0 }
  0x34   : > { %s124_s19 = ssub.s32 %s4417_s20, %s5756_s25  ;;  %s127_s18 = sadd.s32 1, %s4393_s29 }
  0x35   : > { %s5760_s26 = smov (%p70_p8, %s5758_s26), 0  ;;  %p4639_p10 = por %p89_p9, %p5640_p7 }
  0x36   : > { %5688 = sst [smem:[#allocation48_spill]] %s5760_s26  ;;  %p125_p11 = scmp.eq.s32.totalorder %s124_s19, 0 }
  0x37   : > { %s5689_s14 = scalar_select %p4639_p10, 1, 0 }
  0x38   : > { %s72_s13 = ssub.s32 %s4421_s21, %s5760_s26  ;;  %p134_p12 = scmp.ne.s32.totalorder %s4393_s29, %s4389_s28 }
  0x39   : > { %5690 = sst [smem:[#allocation49_spill]] %s5689_s14  ;;  %p73_p13 = scmp.eq.s32.totalorder %s72_s13, 0 }
  0x3a   : > { %p140_p0 = scmp.ne.s32.totalorder %s4389_s28, %s4385_s0  ;;  %p4657_p1 = por %p134_p12, %p83_p5 }
  0x3b   : > { %s4650_s11 = scalar_select %p125_p11, %s4393_s29, %s127_s18  }
  0x3c   : > { %s4653_s25 = scalar_select %p73_p13, %s4405_s17, %s75_s27  }
  0x3d   : > { %5691 = sst [smem:[#allocation50_spill]] %s4650_s11  ;;  %p4663_p2 = por %p140_p0, %p89_p9 }
  0x3e   : > { %5692 = sst [smem:[#allocation51_spill]] %s4653_s25  ;;  %p450_p3 = scmp.eq.s32.totalorder %s4605_s23, 3 }
  0x3f   : > { %s5693_s9 = scalar_select %p4657_p1, 1, 0 }
  0x40   : > { %s5694_s7 = scalar_select %p4663_p2, 1, 0 }
  0x41   : > { %p456_p8 = scmp.eq.s32.totalorder %s3205_s24, 3  ;;  %p4671_p7 = por %p450_p3, %p82_p4 }
  0x42   : > { %5695 = sst [smem:[#allocation52_spill]] %s5694_s7  ;;  %p5698_p11 = scmp.ne.s32.totalorder %s4401_s16, %s4397_s30 }
  0x43   : > { %s5696_s13 = scalar_select %p4671_p7, 1, 0 }
  0x44   : > { %p4678_p13 = por %p456_p8, %p5698_p11  ;;  %p3207_p5 = scmp.ge.s32.totalorder %s4425_s22, 4 }
  0x45   : > { %5697 = sst [smem:[#allocation53_spill]] %s5696_s13  ;;  %s4684_s18 = sand.u32 (!%p3207_p5), 1, %s4405_s17  }
  0x46   : > { %s5699_s0 = scalar_select %p4678_p13, 1, 0 }
  0x47   : > { %472 = sbr.rel (%p3207_p5) target bundleno = 449 (0x1c1), region = 16  ;;  %s4687_s19 = sand.u32 (!%p3207_p5), 1, %s4425_s22  }
  0x48   : > { %5700 = sst [smem:[#allocation54_spill]] %s5699_s0  ;;  %s3211_s24 = sshll.u32 (!%p3207_p5), %s4421_s21, 4 }
  0x49   : > { %s500_s27 = scalar_lea.vmem (!%p3207_p5), [#allocation8], %s4684_s18  ;;  %s5701_s2 = sld [smem:[#allocation56_spill]] (!%p3207_p5) }
  0x4a   : > { %s507_s26 = sshll.u32 (!%p3207_p5), %s500_s27, 4  ;;  %s5655_s30 = scalar_lea.sflag (!%p3207_p5), [#allocation9], %s4687_s19  ;;  %s508_s26 = int_to_ptr.vmem [resolvable:$true] %s507_s26 }
  0x4f   : > { %s4694_s0 = scalar_lea.hbm %s5701_s2, %s3211_s24  ;;  %s3881_s27 = scalar_lea.hbm %s5701_s2, 32 }
  0x50   : > { %s3877_s17 = scalar_lea.hbm %s4694_s0, 16  ;;  %p3882_p0 = scmp.lt.u32.totalorder %s4694_s0, %s5701_s2 }
  0x51   : > { %p3878_p4 = scmp.ne.s32.totalorder %s4694_s0, %s3877_s17  ;;  %p3883_p3 = scmp.lt.u32.totalorder %s3881_s27, %s3877_s17 }
  0x52   : > { %p3885_p11 = scmp.lt.u32.totalorder %s3877_s17, %s4694_s0 }
  0x53   : > { %p3879_p9 = pnand %p3878_p4, %p4622_p6  ;;  %p3884_p8 = por %p3883_p3, %p3882_p0 }
  0x55   : > { %p3880_p12 = pneg %p3879_p9  ;;  %p3886_p5 = por %p3885_p11, %p3884_p8 }
  0x57   : > { %p3887_p13 = pnand %p3886_p5, %p3880_p12 }
  0x59   : > { %3890 = shalt.err (!%p3887_p13)
}
  0x5a   : > { %s3891_s11 = scalar_lea.vmem %s508_s26, 16  ;;  %s4428_s25 = smov [#allocation8]  }
  0x5b   : > { %p3892_p7 = scmp.ne.s32.totalorder %s508_s26, %s3891_s11  ;;  %s3895_s24 = sshll.u32 %s4428_s25, 4  ;;  %s3896_s24 = int_to_ptr.vmem [resolvable:$false] %s3895_s24 }
  0x5c   : > { %s3897_s7 = scalar_lea.vmem %s3896_s24, 32  ;;  %p3898_p2 = scmp.lt.s32.totalorder %s508_s26, %s3896_s24 }
  0x5d   : > { %p3893_p4 = pnand %p3892_p7, %p4622_p6  ;;  %p3899_p10 = scmp.lt.s32.totalorder %s3897_s7, %s3891_s11 }
  0x5f   : > { %p3894_p9 = pneg %p3893_p4  ;;  %p3900_p1 = por %p3899_p10, %p3898_p2 }
  0x61   : > { %p3901_p0 = pnand %p3900_p1, %p3894_p9 }
  0x63   : > { %3904 = shalt.err (!%p3901_p0)
}
  0x64   : > { %3554 = dma.hbm_to_vmem [thread:$0]  (%p4622_p6), %s4694_s0, 16, %s508_s26, %s5655_s30  }
  0x65   : > { %s4717_s28 = sand.u32 1, %s4393_s29   ;;  %s3550_s23 = smul.u32 48, %s4417_s20 }
  0x66   : > { %s3549_s17 = smul.u32 3, %s4717_s28  ;;  %s4722_s13 = sshll.u32 %s4417_s20, 4 }
  0x67   : > { %s5702_s4 = sld [smem:[#allocation58_spill]]  ;;  %s4735_s30 = scalar_lea.hbm %s5623_s6, %s4722_s13 }
  0x68   : > { %s539_s24 = scalar_lea.vmem [#allocation11], %s3549_s17  ;;  %s5665_s2 = scalar_lea.sflag [#allocation12], %s4687_s19 }
  0x69   : > { %s547_s7 = sshll.u32 %s539_s24, 4  ;;  %p5703_p10 = scmp.ne.s32.totalorder %s5693_s9, 0  ;;  %s4729_s7 = int_to_ptr.vmem [resolvable:$true] %s547_s7 }
  0x6d   : > { %s4727_s25 = scalar_lea.hbm %s5702_s4, %s3550_s23  ;;  %s3909_s11 = scalar_lea.hbm %s5702_s4, 144 }
  0x6e   : > { %s3905_s29 = scalar_lea.hbm %s4727_s25, 48  ;;  %p3910_p13 = scmp.lt.u32.totalorder %s4727_s25, %s5702_s4 }
  0x6f   : > { %p3906_p7 = scmp.ne.s32.totalorder %s4727_s25, %s3905_s29  ;;  %p3911_p12 = scmp.lt.u32.totalorder %s3909_s11, %s3905_s29 }
  0x70   : > { %p3913_p8 = scmp.lt.u32.totalorder %s3905_s29, %s4727_s25 }
  0x71   : > { %p3907_p1 = pnand %p3906_p7, %p5703_p10  ;;  %p3912_p3 = por %p3911_p12, %p3910_p13 }
  0x73   : > { %p3908_p2 = pneg %p3907_p1  ;;  %p3914_p11 = por %p3913_p8, %p3912_p3 }
  0x75   : > { %p3915_p5 = pnand %p3914_p11, %p3908_p2 }
  0x77   : > { %3918 = shalt.err (!%p3915_p5)
}
  0x78   : > { %s3919_s24 = scalar_lea.vmem %s4729_s7, 48  ;;  %s4429_s26 = smov [#allocation11]  }
  0x79   : > { %p3920_p4 = scmp.ne.s32.totalorder %s4729_s7, %s3919_s24  ;;  %s3923_s0 = sshll.u32 %s4429_s26, 4  ;;  %s3924_s0 = int_to_ptr.vmem [resolvable:$false] %s3923_s0 }
  0x7a   : > { %s3925_s14 = scalar_lea.vmem %s3924_s0, 96  ;;  %p3926_p7 = scmp.lt.s32.totalorder %s4729_s7, %s3924_s0 }
  0x7b   : > { %p3921_p9 = pnand %p3920_p4, %p5703_p10  ;;  %p3927_p1 = scmp.lt.s32.totalorder %s3925_s14, %s3919_s24 }
  0x7d   : > { %p3922_p0 = pneg %p3921_p9  ;;  %p3928_p13 = por %p3927_p1, %p3926_p7 }
  0x7f   : > { %p3929_p12 = pnand %p3928_p13, %p3922_p0 }
  0x81   : > { %3932 = shalt.err (!%p3929_p12)
}
  0x82   : > { %3556 = dma.hbm_to_vmem [thread:$0]  (%p5703_p10), %s4727_s25, 48, %s4729_s7, %s5665_s2  }
  0x83   : > { %s578_s29 = scalar_lea.vmem [#allocation14], %s4717_s28  ;;  %s5661_s27 = scalar_lea.sflag [#allocation15], %s4687_s19 }
  0x84   : > { %s585_s23 = sshll.u32 %s578_s29, 4  ;;  %s3933_s11 = scalar_lea.hbm %s4735_s30, 16  ;;  %s586_s23 = int_to_ptr.vmem [resolvable:$true] %s585_s23 }
  0x85   : > { %p3934_p2 = scmp.ne.s32.totalorder %s4735_s30, %s3933_s11  ;;  %s3937_s26 = scalar_lea.hbm %s5623_s6, 48 }
  0x86   : > { %p3938_p11 = scmp.lt.u32.totalorder %s4735_s30, %s5623_s6  ;;  %p3939_p5 = scmp.lt.u32.totalorder %s3937_s26, %s3933_s11 }
  0x87   : > { %p3935_p3 = pnand %p3934_p2, %p5703_p10  ;;  %p3941_p9 = scmp.lt.u32.totalorder %s3933_s11, %s4735_s30 }
  0x88   : > { %p3940_p4 = por %p3939_p5, %p3938_p11 }
  0x89   : > { %p3936_p8 = pneg %p3935_p3 }
  0x8a   : > { %p3942_p0 = por %p3941_p9, %p3940_p4 }
  0x8c   : > { %p3943_p7 = pnand %p3942_p0, %p3936_p8 }
  0x8e   : > { %3946 = shalt.err (!%p3943_p7)
}
  0x8f   : > { %s3947_s25 = scalar_lea.vmem %s586_s23, 16  ;;  %s4430_s7 = smov [#allocation14]  }
  0x90   : > { %p3948_p1 = scmp.ne.s32.totalorder %s586_s23, %s3947_s25  ;;  %s3951_s29 = sshll.u32 %s4430_s7, 4  ;;  %s3952_s29 = int_to_ptr.vmem [resolvable:$false] %s3951_s29 }
  0x91   : > { %s3953_s17 = scalar_lea.vmem %s3952_s29, 32  ;;  %p3954_p2 = scmp.lt.s32.totalorder %s586_s23, %s3952_s29 }
  0x92   : > { %p3949_p13 = pnand %p3948_p1, %p5703_p10  ;;  %p3955_p3 = scmp.lt.s32.totalorder %s3953_s17, %s3947_s25 }
  0x94   : > { %p3950_p12 = pneg %p3949_p13  ;;  %p3956_p6 = por %p3955_p3, %p3954_p2 }
  0x96   : > { %p3957_p5 = pnand %p3956_p6, %p3950_p12 }
  0x98   : > { %3960 = shalt.err (!%p3957_p5)
}
  0x99   : > { %3558 = dma.hbm_to_vmem [thread:$0]  (%p5703_p10), %s4735_s30, 16, %s586_s23, %s5661_s27  }
  0x9a   : > { %s4786_s26 = scalar_lea.hbm %s5625_s8, %s4722_s13  ;;  %s612_s0 = scalar_lea.vmem [#allocation17], %s4717_s28 }
  0x9b   : > { %s619_s14 = sshll.u32 %s612_s0, 4  ;;  %s5662_s25 = scalar_lea.sflag [#allocation18], %s4687_s19  ;;  %s620_s14 = int_to_ptr.vmem [resolvable:$true] %s619_s14 }
  0x9c   : > { %s3961_s7 = scalar_lea.hbm %s4786_s26, 16  ;;  %s3965_s23 = scalar_lea.hbm %s5625_s8, 48 }
  0x9d   : > { %p3962_p6 = scmp.ne.s32.totalorder %s4786_s26, %s3961_s7  ;;  %p3966_p4 = scmp.lt.u32.totalorder %s4786_s26, %s5625_s8 }
  0x9e   : > { %p3967_p9 = scmp.lt.u32.totalorder %s3965_s23, %s3961_s7  ;;  %p3969_p7 = scmp.lt.u32.totalorder %s3961_s7, %s4786_s26 }
  0x9f   : > { %p3963_p8 = pnand %p3962_p6, %p5703_p10 }
  0xa0   : > { %p3968_p0 = por %p3967_p9, %p3966_p4 }
  0xa1   : > { %p3964_p11 = pneg %p3963_p8 }
  0xa2   : > { %p3970_p1 = por %p3969_p7, %p3968_p0 }
  0xa4   : > { %p3971_p13 = pnand %p3970_p1, %p3964_p11 }
  0xa6   : > { %3974 = shalt.err (!%p3971_p13)
}
  0xa7   : > { %s3975_s24 = scalar_lea.vmem %s620_s14, 16  ;;  %s4431_s0 = smov [#allocation17]  }
  0xa8   : > { %p3976_p12 = scmp.ne.s32.totalorder %s620_s14, %s3975_s24  ;;  %s3979_s27 = sshll.u32 %s4431_s0, 4  ;;  %s3980_s27 = int_to_ptr.vmem [resolvable:$false] %s3979_s27 }
  0xa9   : > { %s3981_s29 = scalar_lea.vmem %s3980_s27, 32  ;;  %p3982_p5 = scmp.lt.s32.totalorder %s620_s14, %s3980_s27 }
  0xaa   : > { %p3977_p2 = pnand %p3976_p12, %p5703_p10  ;;  %p3983_p6 = scmp.lt.s32.totalorder %s3981_s29, %s3975_s24 }
  0xac   : > { %p3978_p3 = pneg %p3977_p2  ;;  %p3984_p8 = por %p3983_p6, %p3982_p5 }
  0xae   : > { %p3985_p4 = pnand %p3984_p8, %p3978_p3 }
  0xb0   : > { %3988 = shalt.err (!%p3985_p4)
}
  0xb1   : > { %3560 = dma.hbm_to_vmem [thread:$0]  (%p5703_p10), %s4786_s26, 16, %s620_s14, %s5662_s25  }
  0xb2   : > { %s3223_s7 = sshll.u32 %s4717_s28, 2  ;;  %s3364_s30 = sshll.u32 %s4417_s20, 6 }
  0xb3   : > { %s4814_s27 = scalar_lea.hbm %s5627_s10, %s3364_s30  ;;  %s651_s11 = scalar_lea.vmem [#allocation20], %s3223_s7 }
  0xb4   : > { %s659_s24 = sshll.u32 %s651_s11, 4  ;;  %s5663_s0 = scalar_lea.sflag [#allocation21], %s4687_s19  ;;  %s660_s24 = int_to_ptr.vmem [resolvable:$true] %s659_s24 }
  0xb5   : > { %s3989_s29 = scalar_lea.hbm %s4814_s27, 64  ;;  %s3993_s25 = scalar_lea.hbm %s5627_s10, 192 }
  0xb6   : > { %p3990_p11 = scmp.ne.s32.totalorder %s4814_s27, %s3989_s29  ;;  %p3994_p7 = scmp.lt.u32.totalorder %s4814_s27, %s5627_s10 }
  0xb7   : > { %p3995_p1 = scmp.lt.u32.totalorder %s3993_s25, %s3989_s29  ;;  %p3997_p12 = scmp.lt.u32.totalorder %s3989_s29, %s4814_s27 }
  0xb8   : > { %p3991_p9 = pnand %p3990_p11, %p5703_p10 }
  0xb9   : > { %p3996_p13 = por %p3995_p1, %p3994_p7 }
  0xba   : > { %p3992_p0 = pneg %p3991_p9 }
  0xbb   : > { %p3998_p2 = por %p3997_p12, %p3996_p13 }
  0xbd   : > { %p3999_p3 = pnand %p3998_p2, %p3992_p0 }
  0xbf   : > { %4002 = shalt.err (!%p3999_p3)
}
  0xc0   : > { %s4003_s7 = scalar_lea.vmem %s660_s24, 64  ;;  %s4432_s17 = smov [#allocation20]  }
  0xc1   : > { %p4004_p5 = scmp.ne.s32.totalorder %s660_s24, %s4003_s7  ;;  %s4007_s11 = sshll.u32 %s4432_s17, 4  ;;  %s4008_s11 = int_to_ptr.vmem [resolvable:$false] %s4007_s11 }
  0xc2   : > { %s4009_s26 = scalar_lea.vmem %s4008_s11, 128  ;;  %p4010_p4 = scmp.lt.s32.totalorder %s660_s24, %s4008_s11 }
  0xc3   : > { %p4005_p6 = pnand %p4004_p5, %p5703_p10  ;;  %p4011_p11 = scmp.lt.s32.totalorder %s4009_s26, %s4003_s7 }
  0xc5   : > { %p4006_p8 = pneg %p4005_p6  ;;  %p4012_p9 = por %p4011_p11, %p4010_p4 }
  0xc7   : > { %p4013_p1 = pnand %p4012_p9, %p4006_p8 }
  0xc9   : > { %4016 = shalt.err (!%p4013_p1)
}
  0xca   : > { %3562 = dma.hbm_to_vmem [thread:$0]  (%p5703_p10), %s4814_s27, 64, %s660_s24, %s5663_s0  }
  0xcb   : > { %s4840_s14 = scalar_lea.hbm %s5629_s12, %s4722_s13  ;;  %s690_s23 = scalar_lea.vmem [#allocation23], %s4717_s28 }
  0xcc   : > { %s697_s30 = sshll.u32 %s690_s23, 4  ;;  %s5664_s7 = scalar_lea.sflag [#allocation24], %s4687_s19  ;;  %s698_s30 = int_to_ptr.vmem [resolvable:$true] %s697_s30 }
  0xcd   : > { %s4017_s17 = scalar_lea.hbm %s4840_s14, 16  ;;  %s4021_s24 = scalar_lea.hbm %s5629_s12, 48 }
  0xce   : > { %p4018_p0 = scmp.ne.s32.totalorder %s4840_s14, %s4017_s17  ;;  %p4022_p12 = scmp.lt.u32.totalorder %s4840_s14, %s5629_s12 }
  0xcf   : > { %p4023_p2 = scmp.lt.u32.totalorder %s4021_s24, %s4017_s17  ;;  %p4025_p5 = scmp.lt.u32.totalorder %s4017_s17, %s4840_s14 }
  0xd0   : > { %p4019_p7 = pnand %p4018_p0, %p5703_p10 }
  0xd1   : > { %p4024_p3 = por %p4023_p2, %p4022_p12 }
  0xd2   : > { %p4020_p13 = pneg %p4019_p7 }
  0xd3   : > { %p4026_p6 = por %p4025_p5, %p4024_p3 }
  0xd5   : > { %p4027_p8 = pnand %p4026_p6, %p4020_p13 }
  0xd7   : > { %4030 = shalt.err (!%p4027_p8)
}
  0xd8   : > { %s4031_s29 = scalar_lea.vmem %s698_s30, 16  ;;  %s4433_s23 = smov [#allocation23]  }
  0xd9   : > { %p4032_p4 = scmp.ne.s32.totalorder %s698_s30, %s4031_s29  ;;  %s4035_s0 = sshll.u32 %s4433_s23, 4  ;;  %s4036_s0 = int_to_ptr.vmem [resolvable:$false] %s4035_s0 }
  0xda   : > { %s4037_s11 = scalar_lea.vmem %s4036_s0, 32  ;;  %p4038_p1 = scmp.lt.s32.totalorder %s698_s30, %s4036_s0 }
  0xdb   : > { %p4033_p11 = pnand %p4032_p4, %p5703_p10  ;;  %p4039_p0 = scmp.lt.s32.totalorder %s4037_s11, %s4031_s29 }
  0xdd   : > { %p4034_p9 = pneg %p4033_p11  ;;  %p4040_p7 = por %p4039_p0, %p4038_p1 }
  0xdf   : > { %p4041_p2 = pnand %p4040_p7, %p4034_p9 }
  0xe1   : > { %4044 = shalt.err (!%p4041_p2)
}
  0xe2   : > { %3564 = dma.hbm_to_vmem [thread:$0]  (%p5703_p10), %s4840_s14, 16, %s698_s30, %s5664_s7  }
  0xe3   : > { %s3208_s17 = sshll.u32 %s4684_s18, 4  ;;  %s3361_s27 = sshll.u32 %s4421_s21, 8 }
  0xe4   : > { %s5704_s1 = sld [smem:[#allocation55_spill]]  ;;  %s480_s25 = scalar_lea.vmem [#allocation5], %s3208_s17 }
  0xe5   : > { %s487_s29 = sshll.u32 %s480_s25, 4  ;;  %s477_s23 = scalar_lea.sflag [#allocation6], %s4684_s18  ;;  %s4870_s29 = int_to_ptr.vmem [resolvable:$true] %s487_s29 }
  0xe6   : > { %p5705_p12 = scmp.ne.s32.totalorder %s5687_s15, 0 }
  0xea   : > { %s4868_s0 = scalar_lea.hbm %s5704_s1, %s3361_s27  ;;  %s4049_s24 = scalar_lea.hbm %s5704_s1, 512 }
  0xeb   : > { %s4045_s11 = scalar_lea.hbm %s4868_s0, 256  ;;  %p4050_p6 = scmp.lt.u32.totalorder %s4868_s0, %s5704_s1 }
  0xec   : > { %p4046_p13 = scmp.ne.s32.totalorder %s4868_s0, %s4045_s11  ;;  %p4051_p8 = scmp.lt.u32.totalorder %s4049_s24, %s4045_s11 }
  0xed   : > { %p4053_p11 = scmp.lt.u32.totalorder %s4045_s11, %s4868_s0 }
  0xee   : > { %p4047_p3 = pnand %p4046_p13, %p5705_p12  ;;  %p4052_p4 = por %p4051_p8, %p4050_p6 }
  0xf0   : > { %p4048_p5 = pneg %p4047_p3  ;;  %p4054_p9 = por %p4053_p11, %p4052_p4 }
  0xf2   : > { %p4055_p1 = pnand %p4054_p9, %p4048_p5 }
  0xf4   : > { %4058 = shalt.err (!%p4055_p1)
}
  0xf5   : > { %s4059_s17 = scalar_lea.vmem %s4870_s29, 256  ;;  %s4434_s25 = smov [#allocation5]  }
  0xf6   : > { %p4060_p0 = scmp.ne.s32.totalorder %s4870_s29, %s4059_s17  ;;  %s4063_s14 = sshll.u32 %s4434_s25, 4  ;;  %s4064_s14 = int_to_ptr.vmem [resolvable:$false] %s4063_s14 }
  0xf7   : > { %s4065_s30 = scalar_lea.vmem %s4064_s14, 512  ;;  %p4066_p13 = scmp.lt.s32.totalorder %s4870_s29, %s4064_s14 }
  0xf8   : > { %p4061_p7 = pnand %p4060_p0, %p5705_p12  ;;  %p4067_p3 = scmp.lt.s32.totalorder %s4065_s30, %s4059_s17 }
  0xfa   : > { %p4062_p2 = pneg %p4061_p7  ;;  %p4068_p6 = por %p4067_p3, %p4066_p13 }
  0xfc   : > { %p4069_p8 = pnand %p4068_p6, %p4062_p2 }
  0xfe   : > { %4072 = shalt.err (!%p4069_p8)
}
  0xff   : > { %s4435_s11 = smov 128   ;;  %s4436_s24 = smov 8  }
 0x100   : > { %3553 = dma.hbm_to_vmem [thread:$0]  (%p5705_p12), %s4868_s0, 256, %s4870_s29, %s477_s23, %s4435_s11, %s4435_s11, %s4436_s24  }
 0x101   : > { %s3547_s27 = smul.u32 192, %s4717_s28  ;;  %s3214_s25 = sshll.u32 %s4717_s28, 6 }
 0x102   : > { %s3548_s26 = smul.u32 3072, %s4417_s20  ;;  %s5706_s3 = sld [smem:[#allocation57_spill]] }
 0x103   : > { %s518_s7 = scalar_lea.vmem [#allocation10], %s3547_s27 }
 0x104   : > { %s525_s2 = sshll.u32 %s518_s7, 4  ;;  %s4904_s2 = int_to_ptr.vmem [resolvable:$true] %s525_s2 }
 0x108   : > { %s4902_s30 = scalar_lea.hbm %s5706_s3, %s3548_s26  ;;  %s4077_s0 = scalar_lea.hbm %s5706_s3, 9216 }
 0x109   : > { %s4073_s1 = scalar_lea.hbm %s4902_s30, 3072  ;;  %p4078_p11 = scmp.lt.u32.totalorder %s4902_s30, %s5706_s3 }
 0x10a   : > { %p4074_p5 = scmp.ne.s32.totalorder %s4902_s30, %s4073_s1  ;;  %p4079_p9 = scmp.lt.u32.totalorder %s4077_s0, %s4073_s1 }
 0x10b   : > { %p4081_p0 = scmp.lt.u32.totalorder %s4073_s1, %s4902_s30 }
 0x10c   : > { %p4075_p12 = pnand %p4074_p5, %p5703_p10  ;;  %p4080_p1 = por %p4079_p9, %p4078_p11 }
 0x10e   : > { %p4076_p4 = pneg %p4075_p12  ;;  %p4082_p7 = por %p4081_p0, %p4080_p1 }
 0x110   : > { %p4083_p2 = pnand %p4082_p7, %p4076_p4 }
 0x112   : > { %4086 = shalt.err (!%p4083_p2)
}
 0x113   : > { %s4087_s7 = scalar_lea.vmem %s4904_s2, 3072  ;;  %s4437_s11 = smov [#allocation10]  }
 0x114   : > { %p4088_p13 = scmp.ne.s32.totalorder %s4904_s2, %s4087_s7  ;;  %s4091_s24 = sshll.u32 %s4437_s11, 4  ;;  %s4092_s24 = int_to_ptr.vmem [resolvable:$false] %s4091_s24 }
 0x115   : > { %s4093_s27 = scalar_lea.vmem %s4092_s24, 6144  ;;  %p4094_p8 = scmp.lt.s32.totalorder %s4904_s2, %s4092_s24 }
 0x116   : > { %p4089_p3 = pnand %p4088_p13, %p5703_p10  ;;  %p4095_p5 = scmp.lt.s32.totalorder %s4093_s27, %s4087_s7 }
 0x118   : > { %p4090_p6 = pneg %p4089_p3  ;;  %p4096_p12 = por %p4095_p5, %p4094_p8 }
 0x11a   : > { %p4097_p11 = pnand %p4096_p12, %p4090_p6 }
 0x11c   : > { %4100 = shalt.err (!%p4097_p11)
}
 0x11d   : > { %s4438_s1 = smov 192   ;;  %s4439_s26 = smov 12  }
 0x11e   : > { %s5707_s17 = scalar_lea.sflag [#allocation9], %s4687_s19  ;;  %s3362_s14 = sshll.u32 %s4417_s20, 10 }
 0x11f   : > { %3555 = dma.hbm_to_vmem [thread:$0]  (%p5703_p10), %s4902_s30, 3072, %s4904_s2, %s5707_s17, %s4438_s1, %s4438_s1, %s4439_s26  }
 0x120   : > { %s558_s15 = scalar_lea.vmem [#allocation13], %s3214_s25  ;;  %s4935_s23 = scalar_lea.hbm %s5622_s5, %s3362_s14 }
 0x121   : > { %s565_s18 = sshll.u32 %s558_s15, 4  ;;  %s4101_s7 = scalar_lea.hbm %s4935_s23, 1024  ;;  %s4937_s18 = int_to_ptr.vmem [resolvable:$true] %s565_s18 }
 0x122   : > { %p4102_p4 = scmp.ne.s32.totalorder %s4935_s23, %s4101_s7  ;;  %s4105_s25 = scalar_lea.hbm %s5622_s5, 3072 }
 0x123   : > { %p4106_p0 = scmp.lt.u32.totalorder %s4935_s23, %s5622_s5  ;;  %p4107_p7 = scmp.lt.u32.totalorder %s4105_s25, %s4101_s7 }
 0x124   : > { %p4103_p9 = pnand %p4102_p4, %p5703_p10  ;;  %p4109_p13 = scmp.lt.u32.totalorder %s4101_s7, %s4935_s23 }
 0x125   : > { %p4108_p2 = por %p4107_p7, %p4106_p0 }
 0x126   : > { %p4104_p1 = pneg %p4103_p9 }
 0x127   : > { %p4110_p3 = por %p4109_p13, %p4108_p2 }
 0x129   : > { %p4111_p6 = pnand %p4110_p3, %p4104_p1 }
 0x12b   : > { %4114 = shalt.err (!%p4111_p6)
}
 0x12c   : > { %s4115_s27 = scalar_lea.vmem %s4937_s18, 1024  ;;  %s4440_s1 = smov [#allocation13]  }
 0x12d   : > { %p4116_p8 = scmp.ne.s32.totalorder %s4937_s18, %s4115_s27  ;;  %s4119_s26 = sshll.u32 %s4440_s1, 4  ;;  %s4120_s26 = int_to_ptr.vmem [resolvable:$false] %s4119_s26 }
 0x12e   : > { %s4121_s17 = scalar_lea.vmem %s4120_s26, 2048  ;;  %p4122_p11 = scmp.lt.s32.totalorder %s4937_s18, %s4120_s26 }
 0x12f   : > { %p4117_p5 = pnand %p4116_p8, %p5703_p10  ;;  %p4123_p4 = scmp.lt.s32.totalorder %s4121_s17, %s4115_s27 }
 0x131   : > { %p4118_p12 = pneg %p4117_p5  ;;  %p4124_p9 = por %p4123_p4, %p4122_p11 }
 0x133   : > { %p4125_p0 = pnand %p4124_p9, %p4118_p12 }
 0x135   : > { %4128 = shalt.err (!%p4125_p0)
}
 0x136   : > { %s5666_s14 = smov 64   ;;  %s5667_s15 = smov 4  }
 0x137   : > { %s5708_s0 = scalar_lea.sflag [#allocation12], %s4687_s19  ;;  %s5709_s2 = sld [smem:[#allocation59_spill]] }
 0x138   : > { %3557 = dma.hbm_to_vmem [thread:$0]  (%p5703_p10), %s4935_s23, 1024, %s4937_s18, %s5708_s0, %s5666_s14, %s5666_s14, %s5667_s15  }
 0x139   : > { %s595_s25 = scalar_lea.vmem [#allocation16], %s4717_s28  ;;  %s3220_s24 = sshll.u32 %s4717_s28, 8 }
 0x13a   : > { %s602_s11 = sshll.u32 %s595_s25, 4  ;;  %s603_s11 = int_to_ptr.vmem [resolvable:$true] %s602_s11 }
 0x13d   : > { %s4969_s30 = scalar_lea.hbm %s5709_s2, %s4722_s13  ;;  %s4133_s23 = scalar_lea.hbm %s5709_s2, 48 }
 0x13e   : > { %s4129_s27 = scalar_lea.hbm %s4969_s30, 16  ;;  %p4134_p13 = scmp.lt.u32.totalorder %s4969_s30, %s5709_s2 }
 0x13f   : > { %p4130_p1 = scmp.ne.s32.totalorder %s4969_s30, %s4129_s27  ;;  %p4135_p3 = scmp.lt.u32.totalorder %s4133_s23, %s4129_s27 }
 0x140   : > { %p4137_p8 = scmp.lt.u32.totalorder %s4129_s27, %s4969_s30 }
 0x141   : > { %p4131_p7 = pnand %p4130_p1, %p5703_p10  ;;  %p4136_p6 = por %p4135_p3, %p4134_p13 }
 0x143   : > { %p4132_p2 = pneg %p4131_p7  ;;  %p4138_p5 = por %p4137_p8, %p4136_p6 }
 0x145   : > { %p4139_p12 = pnand %p4138_p5, %p4132_p2 }
 0x147   : > { %4142 = shalt.err (!%p4139_p12)
}
 0x148   : > { %s4143_s0 = scalar_lea.vmem %s603_s11, 16  ;;  %s4443_s29 = smov [#allocation16]  }
 0x149   : > { %p4144_p11 = scmp.ne.s32.totalorder %s603_s11, %s4143_s0  ;;  %s4147_s7 = sshll.u32 %s4443_s29, 4  ;;  %s4148_s7 = int_to_ptr.vmem [resolvable:$false] %s4147_s7 }
 0x14a   : > { %s4149_s25 = scalar_lea.vmem %s4148_s7, 32  ;;  %p4150_p0 = scmp.lt.s32.totalorder %s603_s11, %s4148_s7 }
 0x14b   : > { %p4145_p4 = pnand %p4144_p11, %p5703_p10  ;;  %p4151_p1 = scmp.lt.s32.totalorder %s4149_s25, %s4143_s0 }
 0x14d   : > { %p4146_p9 = pneg %p4145_p4  ;;  %p4152_p7 = por %p4151_p1, %p4150_p0 }
 0x14f   : > { %p4153_p3 = pnand %p4152_p7, %p4146_p9 }
 0x151   : > { %4156 = shalt.err (!%p4153_p3)
}
 0x152   : > { %s5710_s27 = scalar_lea.sflag [#allocation15], %s4687_s19  ;;  %s3363_s1 = sshll.u32 %s4417_s20, 12 }
 0x153   : > { %3559 = dma.hbm_to_vmem [thread:$0]  (%p5703_p10), %s4969_s30, 16, %s603_s11, %s5710_s27  }
 0x154   : > { %s630_s18 = scalar_lea.vmem [#allocation19], %s3220_s24  ;;  %s5711_s0 = sld [smem:[#allocation60_spill]] }
 0x155   : > { %s637_s23 = sshll.u32 %s630_s18, 4  ;;  %s5002_s23 = int_to_ptr.vmem [resolvable:$true] %s637_s23 }
 0x15a   : > { %s5712_s7 = smov %s5711_s0  ;;  %s5000_s29 = scalar_lea.hbm %s5711_s0, %s3363_s1 }
 0x15b   : > { %s4157_s25 = scalar_lea.hbm %s5000_s29, 4096  ;;  %s4161_s27 = scalar_lea.hbm %s5712_s7, 12288 }
 0x15c   : > { %p4158_p2 = scmp.ne.s32.totalorder %s5000_s29, %s4157_s25  ;;  %p4162_p8 = scmp.lt.u32.totalorder %s5000_s29, %s5712_s7 }
 0x15d   : > { %p4163_p5 = scmp.lt.u32.totalorder %s4161_s27, %s4157_s25  ;;  %p4165_p11 = scmp.lt.u32.totalorder %s4157_s25, %s5000_s29 }
 0x15e   : > { %p4159_p13 = pnand %p4158_p2, %p5703_p10 }
 0x15f   : > { %p4164_p12 = por %p4163_p5, %p4162_p8 }
 0x160   : > { %p4160_p6 = pneg %p4159_p13 }
 0x161   : > { %p4166_p4 = por %p4165_p11, %p4164_p12 }
 0x163   : > { %p4167_p9 = pnand %p4166_p4, %p4160_p6 }
 0x165   : > { %4170 = shalt.err (!%p4167_p9)
}
 0x166   : > { %s4171_s26 = scalar_lea.vmem %s5002_s23, 4096  ;;  %s4444_s17 = smov [#allocation19]  }
 0x167   : > { %p4172_p0 = scmp.ne.s32.totalorder %s5002_s23, %s4171_s26  ;;  %s4175_s0 = sshll.u32 %s4444_s17, 4  ;;  %s4176_s0 = int_to_ptr.vmem [resolvable:$false] %s4175_s0 }
 0x168   : > { %s4177_s14 = scalar_lea.vmem %s4176_s0, 8192  ;;  %p4178_p3 = scmp.lt.s32.totalorder %s5002_s23, %s4176_s0 }
 0x169   : > { %p4173_p1 = pnand %p4172_p0, %p5703_p10  ;;  %p4179_p2 = scmp.lt.s32.totalorder %s4177_s14, %s4171_s26 }
 0x16b   : > { %p4174_p7 = pneg %p4173_p1  ;;  %p4180_p13 = por %p4179_p2, %p4178_p3 }
 0x16d   : > { %p4181_p8 = pnand %p4180_p13, %p4174_p7 }
 0x16f   : > { %4184 = shalt.err (!%p4181_p8)
}
 0x170   : > { %s4445_s25 = smov 256   ;;  %s4446_s30 = smov 16  }
 0x171   : > { %s5713_s11 = scalar_lea.sflag [#allocation18], %s4687_s19  ;;  %s5714_s26 = sld [smem:[#allocation61_spill]] }
 0x172   : > { %3561 = dma.hbm_to_vmem [thread:$0]  (%p5703_p10), %s5000_s29, 4096, %s5002_s23, %s5713_s11, %s4445_s25, %s4445_s25, %s4446_s30  }
 0x173   : > { %s670_s0 = scalar_lea.vmem [#allocation22], %s3220_s24  ;;  %s5715_s3 = sld [smem:[#allocation62_spill]] }
 0x174   : > { %s677_s14 = sshll.u32 %s670_s0, 4  ;;  %s5036_s14 = int_to_ptr.vmem [resolvable:$true] %s677_s14 }
 0x177   : > { %s5032_s17 = scalar_lea.hbm %s5714_s26, %s3363_s1  ;;  %s4189_s25 = scalar_lea.hbm %s5714_s26, 12288 }
 0x178   : > { %s4185_s23 = scalar_lea.hbm %s5032_s17, 4096  ;;  %p4190_p11 = scmp.lt.u32.totalorder %s5032_s17, %s5714_s26 }
 0x179   : > { %s5042_s4 = scalar_lea.hbm %s5715_s3, %s4722_s13  ;;  %p4186_p6 = scmp.ne.s32.totalorder %s5032_s17, %s4185_s23 }
 0x17a   : > { %p4191_p4 = scmp.lt.u32.totalorder %s4189_s25, %s4185_s23  ;;  %p4193_p0 = scmp.lt.u32.totalorder %s4185_s23, %s5032_s17 }
 0x17b   : > { %p4187_p5 = pnand %p4186_p6, %p5703_p10 }
 0x17c   : > { %p4192_p9 = por %p4191_p4, %p4190_p11 }
 0x17d   : > { %p4188_p12 = pneg %p4187_p5 }
 0x17e   : > { %p4194_p1 = por %p4193_p0, %p4192_p9 }
 0x180   : > { %p4195_p7 = pnand %p4194_p1, %p4188_p12 }
 0x182   : > { %4198 = shalt.err (!%p4195_p7)
}
 0x183   : > { %s4199_s15 = scalar_lea.vmem %s5036_s14, 4096  ;;  %s4447_s2 = smov [#allocation22]  }
 0x184   : > { %p4200_p3 = scmp.ne.s32.totalorder %s5036_s14, %s4199_s15  ;;  %s4203_s24 = sshll.u32 %s4447_s2, 4  ;;  %s4204_s24 = int_to_ptr.vmem [resolvable:$false] %s4203_s24 }
 0x185   : > { %s4205_s27 = scalar_lea.vmem %s4204_s24, 8192  ;;  %p4206_p8 = scmp.lt.s32.totalorder %s5036_s14, %s4204_s24 }
 0x186   : > { %p4201_p2 = pnand %p4200_p3, %p5703_p10  ;;  %p4207_p6 = scmp.lt.s32.totalorder %s4205_s27, %s4199_s15 }
 0x188   : > { %p4202_p13 = pneg %p4201_p2  ;;  %p4208_p5 = por %p4207_p6, %p4206_p8 }
 0x18a   : > { %p4209_p11 = pnand %p4208_p5, %p4202_p13 }
 0x18c   : > { %4212 = shalt.err (!%p4209_p11)
}
 0x18d   : > { %s5716_s18 = smov 4   ;;  %s5717_s0 = smov 64  }
 0x18e   : > { %s5718_s23 = scalar_lea.sflag [#allocation21], %s4687_s19  ;;  %s707_s1 = scalar_lea.vmem [#allocation25], %s4717_s28 }
 0x18f   : > { %3563 = dma.hbm_to_vmem [thread:$0]  (%p5703_p10), %s5032_s17, 4096, %s5036_s14, %s5718_s23, %s5717_s0, %s5717_s0, %s5716_s18  }
 0x190   : > { %s714_s29 = sshll.u32 %s707_s1, 4  ;;  %s4213_s25 = scalar_lea.hbm %s5042_s4, 16  ;;  %s715_s29 = int_to_ptr.vmem [resolvable:$true] %s714_s29 }
 0x191   : > { %p4214_p12 = scmp.ne.s32.totalorder %s5042_s4, %s4213_s25  ;;  %s4217_s15 = scalar_lea.hbm %s5715_s3, 48 }
 0x192   : > { %p4218_p0 = scmp.lt.u32.totalorder %s5042_s4, %s5715_s3  ;;  %p4219_p1 = scmp.lt.u32.totalorder %s4217_s15, %s4213_s25 }
 0x193   : > { %p4215_p4 = pnand %p4214_p12, %p5703_p10  ;;  %p4221_p3 = scmp.lt.u32.totalorder %s4213_s25, %s5042_s4 }
 0x194   : > { %p4220_p7 = por %p4219_p1, %p4218_p0 }
 0x195   : > { %p4216_p9 = pneg %p4215_p4 }
 0x196   : > { %p4222_p2 = por %p4221_p3, %p4220_p7 }
 0x198   : > { %p4223_p13 = pnand %p4222_p2, %p4216_p9 }
 0x19a   : > { %4226 = shalt.err (!%p4223_p13)
}
 0x19b   : > { %s4227_s17 = scalar_lea.vmem %s715_s29, 16  ;;  %s4448_s14 = smov [#allocation25]  }
 0x19c   : > { %p4228_p8 = scmp.ne.s32.totalorder %s715_s29, %s4227_s17  ;;  %s4231_s27 = sshll.u32 %s4448_s14, 4  ;;  %s4232_s27 = int_to_ptr.vmem [resolvable:$false] %s4231_s27 }
 0x19d   : > { %s4233_s18 = scalar_lea.vmem %s4232_s27, 32  ;;  %p4234_p11 = scmp.lt.s32.totalorder %s715_s29, %s4232_s27 }
 0x19e   : > { %p4229_p6 = pnand %p4228_p8, %p5703_p10  ;;  %p4235_p12 = scmp.lt.s32.totalorder %s4233_s18, %s4227_s17 }
 0x1a0   : > { %p4230_p5 = pneg %p4229_p6  ;;  %p4236_p4 = por %p4235_p12, %p4234_p11 }
 0x1a2   : > { %p4237_p0 = pnand %p4236_p4, %p4230_p5 }
 0x1a4   : > { %4240 = shalt.err (!%p4237_p0)
}
 0x1a5   : > { %s5719_s0 = scalar_lea.sflag [#allocation24], %s4687_s19  ;;  %s5720_s25 = sld [smem:[#allocation63_spill]] }
 0x1a6   : > { %3565 = dma.hbm_to_vmem [thread:$0]  (%p5703_p10), %s5042_s4, 16, %s715_s29, %s5719_s0  }
 0x1a7   : > { %s724_s11 = scalar_lea.vmem [#allocation26], %s4717_s28  ;;  %s722_s2 = scalar_lea.sflag [#allocation27], %s4717_s28 }
 0x1a8   : > { %s731_s15 = sshll.u32 %s724_s11, 4  ;;  %s732_s15 = int_to_ptr.vmem [resolvable:$true] %s731_s15 }
 0x1ab   : > { %s5094_s30 = scalar_lea.hbm %s5720_s25, %s4722_s13  ;;  %s4245_s29 = scalar_lea.hbm %s5720_s25, 48 }
 0x1ac   : > { %s4241_s19 = scalar_lea.hbm %s5094_s30, 16  ;;  %p4246_p3 = scmp.lt.u32.totalorder %s5094_s30, %s5720_s25 }
 0x1ad   : > { %p4242_p9 = scmp.ne.s32.totalorder %s5094_s30, %s4241_s19  ;;  %p4247_p2 = scmp.lt.u32.totalorder %s4245_s29, %s4241_s19 }
 0x1ae   : > { %p4249_p8 = scmp.lt.u32.totalorder %s4241_s19, %s5094_s30 }
 0x1af   : > { %p4243_p1 = pnand %p4242_p9, %p5703_p10  ;;  %p4248_p13 = por %p4247_p2, %p4246_p3 }
 0x1b1   : > { %p4244_p7 = pneg %p4243_p1  ;;  %p4250_p6 = por %p4249_p8, %p4248_p13 }
 0x1b3   : > { %p4251_p5 = pnand %p4250_p6, %p4244_p7 }
 0x1b5   : > { %4254 = shalt.err (!%p4251_p5)
}
 0x1b6   : > { %s4255_s28 = scalar_lea.vmem %s732_s15, 16  ;;  %s4449_s14 = smov [#allocation26]  }
 0x1b7   : > { %p4256_p11 = scmp.ne.s32.totalorder %s732_s15, %s4255_s28  ;;  %s4259_s27 = sshll.u32 %s4449_s14, 4  ;;  %s4260_s27 = int_to_ptr.vmem [resolvable:$false] %s4259_s27 }
 0x1b8   : > { %s4261_s18 = scalar_lea.vmem %s4260_s27, 32  ;;  %p4262_p0 = scmp.lt.s32.totalorder %s732_s15, %s4260_s27 }
 0x1b9   : > { %p4257_p12 = pnand %p4256_p11, %p5703_p10  ;;  %p4263_p9 = scmp.lt.s32.totalorder %s4261_s18, %s4255_s28 }
 0x1bb   : > { %p4258_p4 = pneg %p4257_p12  ;;  %p4264_p1 = por %p4263_p9, %p4262_p0 }
 0x1bd   : > { %p4265_p2 = pnand %p4264_p1, %p4258_p4 }
 0x1bf   : > { %4268 = shalt.err (!%p4265_p2)
}
 0x1c0   : > { %3566 = dma.hbm_to_vmem [thread:$0]  (%p5703_p10), %s5094_s30, 16, %s732_s15, %s722_s2  }
 0x1c1 PF: > { %p3232_p7 = scmp.ge.s32.totalorder %s4425_s22, 1  ;;  %p736_p3 = scmp.lt.s32.totalorder %s4425_s22, 5 }
 0x1c3   : > { %p737_p13 = pnand %p3232_p7, %p736_p3 }
 0x1c4   : > { %s5721_s0 = sld [smem:[#allocation49_spill]] (!%p737_p13)  ;;  %s5118_s23 = sand.u32 (!%p737_p13), 1, %s4401_s16  }
 0x1c5   : > { %740 = sbr.rel (%p737_p13) target bundleno = 4312 (0x10d8), region = 76  ;;  %s3233_s1 = sshll.u32 (!%p737_p13), %s5118_s23, 4 }
 0x1c6   : > { %s743_s11 = scalar_lea.sflag (!%p737_p13), [#allocation6], %s5118_s23  ;;  %s5122_s19 = scalar_lea.vmem (!%p737_p13), [#allocation5], %s3233_s1 }
 0x1ca   : > { %p5722_p8 = scmp.ne.s32.totalorder (!%p737_p13), %s5721_s0, 0 }
 0x1cc   : > { %4344 = dma.done.wait (%p5722_p8), %s743_s11, 256  }
 0x1cd   : > { %4346 = vsyncadd (%p5722_p8), %s743_s11, 4294967040  ;;  %s5723_s9 = sld [smem:[#allocation46_spill]] }
 0x1d3   : > { %s5129_s30 = sand.u32 1, %s5723_s9  }
 0x1d4   : > { %s752_s15 = scalar_lea.sflag [#allocation9], %s5129_s30 }
 0x1d5   : > { %4348 = dma.done.wait (%p5722_p8), %s752_s15, 16  }
 0x1d6   : > { %4350 = vsyncadd (%p5722_p8), %s752_s15, 4294967280  ;;  %s5724_s24 = sld [smem:[#allocation40_spill]]  ;;  %s5725_s4 = sld [smem:[#allocation52_spill]] }
 0x1dc   : > { %s5138_s29 = sand.u32 1, %s5724_s24   ;;  %p5726_p10 = scmp.ne.s32.totalorder %s5725_s4, 0 }
 0x1dd   : > { %s3551_s17 = smul.u32 192, %s5138_s29 }
 0x1df   : > { %s5141_s13 = scalar_lea.vmem [#allocation10], %s3551_s17 }
 0x1e0   : > { %4352 = dma.done.wait (%p5726_p10), %s752_s15, 3072  }
 0x1e1   : > { %4354 = vsyncadd (%p5726_p10), %s752_s15, 4294964224  ;;  %s3552_s28 = smul.u32 3, %s5138_s29  ;;  %s769_s14 = scalar_lea.sflag [#allocation12], %s5129_s30 }
 0x1e3   : > { %s5149_s27 = scalar_lea.vmem [#allocation11], %s3552_s28 }
 0x1e4   : > { %4356 = dma.done.wait (%p5726_p10), %s769_s14, 1072  }
 0x1e5   : > { %4358 = vsyncadd (%p5726_p10), %s769_s14, 4294966224  ;;  %s3234_s18 = sshll.u32 %s5138_s29, 6  ;;  %s787_s1 = scalar_lea.sflag [#allocation15], %s5129_s30 }
 0x1e6   : > { %s5156_s0 = scalar_lea.vmem [#allocation13], %s3234_s18 }
 0x1e7   : > { %4360 = dma.done.wait (%p5726_p10), %s787_s1, 32  }
 0x1e8   : > { %4362 = vsyncadd (%p5726_p10), %s787_s1, 4294967264  ;;  %s803_s15 = scalar_lea.sflag [#allocation18], %s5129_s30 }
 0x1e9   : > { %4364 = dma.done.wait (%p5726_p10), %s803_s15, 4112  }
 0x1ea   : > { %4366 = vsyncadd (%p5726_p10), %s803_s15, 4294963184  ;;  %s3235_s17 = sshll.u32 %s5138_s29, 8  ;;  %s3236_s28 = sshll.u32 %s5138_s29, 2 }
 0x1eb   : > { %s5173_s14 = scalar_lea.vmem [#allocation19], %s3235_s17  ;;  %s820_s18 = scalar_lea.sflag [#allocation21], %s5129_s30 }
 0x1ec   : > { %s5176_s1 = scalar_lea.vmem [#allocation20], %s3236_s28 }
 0x1ed   : > { %4368 = dma.done.wait (%p5726_p10), %s820_s18, 4160  }
 0x1ee   : > { %4370 = vsyncadd (%p5726_p10), %s820_s18, 4294963136  ;;  %s5182_s15 = scalar_lea.vmem [#allocation22], %s3235_s17  ;;  %s838_s24 = scalar_lea.sflag [#allocation24], %s5129_s30 }
 0x1ef   : > { %s840_s9 = scalar_lea.vmem [#allocation23], %s5138_s29 }
 0x1f0   : > { %4372 = dma.done.wait (%p5726_p10), %s838_s24, 32  }
 0x1f1   : > { %4374 = vsyncadd (%p5726_p10), %s838_s24, 4294967264  ;;  %s848_s28 = scalar_lea.vmem [#allocation25], %s5138_s29  ;;  %s854_s11 = scalar_lea.sflag [#allocation27], %s5138_s29 }
 0x1f2   : > { %s856_s2 = scalar_lea.vmem [#allocation26], %s5138_s29 }
 0x1f3   : > { %4376 = dma.done.wait (%p5726_p10), %s854_s11, 16  }
 0x1f4   : > { %4378 = vsyncadd (%p5726_p10), %s854_s11, 4294967280  ;;  %s3238_s30 = sshll.u32 %s5118_s23, 2  ;;  %s5727_s18 = sld [smem:[#allocation44_spill]] }
 0x1f5   : > { %s5198_s17 = scalar_lea.vmem [#allocation28], %s3238_s30 }
 0x1fa   : > { %p3239_p6 = scmp.ne.s32.totalorder %s5727_s18, 0 }
 0x1fb   : > { %v965_v0 = vld [vmem:[%s5122_s19] sm:$0xff] (!%p3239_p6)  ;;  %v966_v1 = vld [vmem:[%s5122_s19 + $0x8] sm:$0xff] (!%p3239_p6) }
 0x1fc   : > { %964 = sbr.rel (%p3239_p6) target bundleno = 515 (0x203), region = 136  ;;  %967 = vst [vmem:[#allocation2] sm:$0xff] (!%p3239_p6), %v965_v0  ;;  %968 = vst [vmem:[#allocation2 + $0x8] sm:$0xff] (!%p3239_p6), %v966_v1 }
 0x203 PF: > { %v3691_v2 = vld [vmem:[%s5141_s13 + $0x4] ss:$12 sps:$4 sm:$0xff]   ;;  %v3693_v3 = vld [vmem:[%s5141_s13] ss:$12 sps:$4 sm:$0xff]   ;;  %v4450_v4 = vmov 0   ;;  %v5222_v20 = vld [vmem:[#allocation2 + $0x8] sm:$0xff]  ;;  %v1006_v23 = vlaneseq }
 0x204   : > { %1181 = vmatprep.mubr.bf16.mxu0 %v4450_v4  ;;  %1149 = vmatprep.subr.bf16.mxu0 %v3691_v2  ;;  %v3694_v5 = vld [vmem:[%s5141_s13 + $0x1c] ss:$12 sps:$4 sm:$0xff]   ;;  %v3696_v6 = vld [vmem:[%s5141_s13 + $0x18] ss:$12 sps:$4 sm:$0xff]   ;;  %v3697_v7 = vld [vmem:[%s5141_s13 + $0x34] ss:$12 sps:$4 sm:$0xff]  }
 0x205   : > { %1150 = vmatpush1.bf16.msra.mxu0 %v3693_v3  ;;  %v3699_v8 = vld [vmem:[%s5141_s13 + $0x30] ss:$12 sps:$4 sm:$0xff]   ;;  %v3700_v9 = vld [vmem:[%s5141_s13 + $0x4c] ss:$12 sps:$4 sm:$0xff]   ;;  %v3702_v10 = vld [vmem:[%s5141_s13 + $0x48] ss:$12 sps:$4 sm:$0xff]  }
 0x206   : > { %1151 = vmatprep.subr.bf16.mxu0 %v3694_v5  ;;  %v3703_v11 = vld [vmem:[%s5141_s13 + $0x64] ss:$12 sps:$4 sm:$0xff]   ;;  %v3705_v12 = vld [vmem:[%s5141_s13 + $0x60] ss:$12 sps:$4 sm:$0xff]   ;;  %v3706_v13 = vld [vmem:[%s5141_s13 + $0x7c] ss:$12 sps:$4 sm:$0xff]  }
 0x207   : > { %v3708_v14 = vld [vmem:[%s5141_s13 + $0x78] ss:$12 sps:$4 sm:$0xff]   ;;  %v3709_v15 = vld [vmem:[%s5141_s13 + $0x94] ss:$12 sps:$4 sm:$0xff]   ;;  %v3711_v16 = vld [vmem:[%s5141_s13 + $0x90] ss:$12 sps:$4 sm:$0xff]  }
 0x208   : > { %v3712_v17 = vld [vmem:[%s5141_s13 + $0xac] ss:$12 sps:$4 sm:$0xff]   ;;  %v3714_v18 = vld [vmem:[%s5141_s13 + $0xa8] ss:$12 sps:$4 sm:$0xff]   ;;  %v4451_v22 = vmov 0.0   ;;  %vm4452_vm0 = vmmov 0  }
 0x209   : > { %1152 = vmatpush1.bf16.msra.mxu0 %v3696_v6  ;;  %v5220_v19 = vld [vmem:[#allocation2] sm:$0xff]  ;;  %3447 = vmatprep.subr.bf16.mxu1 %v4451_v22  ;;  %v5235_v24 = vshrl.u32 %v1006_v23, 7  ;;  %v5239_v26 = vld [vmem:[%s5149_s27] sm:$0x7]  ;;  %vm1237_vm1 = vcmask 261120   ;;  %s4453_s19 = smov 96  }
 0x20a   : > { %1153 = vmatprep.subr.bf16.mxu0 %v3697_v7  ;;  %v5226_v21 = vpack.c.bf16 %v5222_v20, %v5220_v19  ;;  %3463 = vmatprep.mubr.msk.bf16.mxu1 %vm4452_vm0, %v4451_v22  ;;  %v3715_v41 = vld [vmem:[%s5141_s13 + $0x8] ss:$12 sps:$4 sm:$0xff]   ;;  %v3716_v42 = vld [vmem:[%s5141_s13 + $0x20] ss:$12 sps:$4 sm:$0xff]   ;;  %v3717_v43 = vld [vmem:[%s5141_s13 + $0x38] ss:$12 sps:$4 sm:$0xff]  }
 0x20b   : > { %v1008_v25 = vsub.s32 0, %v5235_v24  ;;  %v1012_v27 = vsub.s32 1, %v5235_v24  ;;  %3448 = vmatpush3.bf16.msra.mxu1 %v3715_v41  ;;  %v3718_v44 = vld [vmem:[%s5141_s13 + $0x50] ss:$12 sps:$4 sm:$0xff]   ;;  %v3719_v47 = vld [vmem:[%s5141_s13 + $0x68] ss:$12 sps:$4 sm:$0xff]  }
 0x20c   : > { %3449 = vmatprep.subr.bf16.mxu1 %v4451_v22  ;;  %v3720_v48 = vld [vmem:[%s5141_s13 + $0x80] ss:$12 sps:$4 sm:$0xff]   ;;  %v3721_v50 = vld [vmem:[%s5141_s13 + $0x98] ss:$12 sps:$4 sm:$0xff]   ;;  %v3722_v51 = vld [vmem:[%s5141_s13 + $0xb0] ss:$12 sps:$4 sm:$0xff]  }
 0x20d   : > { %1154 = vmatpush1.bf16.msra.mxu0 %v3699_v8  ;;  %v1009_v28 = vrot.slane %v5239_v26, %v1008_v25  ;;  %v1013_v30 = vrot.slane %v5239_v26, %v1012_v27  ;;  %s5728_s4 = scalar_lea.vmem [#allocation8], %s5118_s23  ;;  %vm1295_vm2 = vcmask 130048   ;;  %s4454_s13 = smov 64  }
 0x20e   : > { %1155 = vmatprep.subr.bf16.mxu0 %v3700_v9  ;;  %v5289_v53 = vld [vmem:[%s5728_s4] ss:$0 sm:$0xff]  ;;  %s4455_s27 = smov 32   ;;  %s5729_s11 = scalar_lea.vmem [#allocation14], %s5138_s29 }
 0x20f   : > { %3450 = vmatpush3.bf16.msra.mxu1 %v3716_v42  ;;  %s5731_s24 = scalar_lea.vmem [#allocation17], %s5138_s29 }
 0x210   : > { %3451 = vmatprep.subr.bf16.mxu1 %v4451_v22 }
 0x211   : > { %1156 = vmatpush1.bf16.msra.mxu0 %v3702_v10 }
 0x212   : > { %1157 = vmatprep.subr.bf16.mxu0 %v3703_v11 }
 0x213   : > { %3452 = vmatpush3.bf16.msra.mxu1 %v3717_v43 }
 0x214   : > { %3453 = vmatprep.subr.bf16.mxu1 %v4451_v22 }
 0x215   : > { %1158 = vmatpush1.bf16.msra.mxu0 %v3705_v12 }
 0x216   : > { %1159 = vmatprep.subr.bf16.mxu0 %v3706_v13 }
 0x217   : > { %3454 = vmatpush3.bf16.msra.mxu1 %v3718_v44 }
 0x218   : > { %3455 = vmatprep.subr.bf16.mxu1 %v4451_v22 }
 0x219   : > { %1160 = vmatpush1.bf16.msra.mxu0 %v3708_v14 }
 0x21a   : > { %1161 = vmatprep.subr.bf16.mxu0 %v3709_v15 }
 0x21b   : > { %3456 = vmatpush3.bf16.msra.mxu1 %v3719_v47 }
 0x21c   : > { %3457 = vmatprep.subr.bf16.mxu1 %v4451_v22 }
 0x21d   : > { %1162 = vmatpush1.bf16.msra.mxu0 %v3711_v16  ;;  %v1016_v16 = vsub.s32 2, %v5235_v24 }
 0x21e   : > { %1163 = vmatprep.subr.bf16.mxu0 %v3712_v17 }
 0x21f   : > { %3458 = vmatpush3.bf16.msra.mxu1 %v3720_v48 }
 0x220   : > { %3459 = vmatprep.subr.bf16.mxu1 %v4451_v22 }
 0x221   : > { %1164 = vmatpush1.bf16.msra.mxu0 %v3714_v18 }
 0x222   : > { %3467 = vmatprep.subr.bf16.mxu0 %v4451_v22 }
 0x223   : > { %3460 = vmatpush3.bf16.msra.mxu1 %v3721_v50 }
 0x224   : > { %1182 = vmatmul.mubr.bf16.vlgmr.msra.gmra.mrb[0].mxu0 %v5226_v21  ;;  %3461 = vmatprep.subr.bf16.mxu1 %v4451_v22 }
 0x225   : > { %3469 = vmatprep.mubr.msk.bf16.mxu0 %vm4452_vm0, %v4451_v22 }
 0x227   : > { %3462 = vmatpush3.bf16.msra.mxu1 %v3722_v51 }
 0x228   : > { %3473 = vmatprep.subr.bf16.mxu1 %v4451_v22 }
 0x22a   : > { %3464 = vmatmul.mubr.bf16.vlgmr.msra.gmra.mrb[0].mxu1 %v5226_v21  ;;  %v1017_v21 = vrot.slane %v5239_v26, %v1016_v16 }
 0x22b   : > { %3475 = vmatprep.mubr.msk.bf16.mxu1 %vm4452_vm0, %v4451_v22 }
 0x2f7   : > { %v1183_v29 = vpop.f32.mrb[0].mxu0 }
 0x2f8   : > { %v1185_v31 = vpop.f32.mrb[1].mxu0  ;;  %v1184_v33 = vadd.f32 %v1183_v29, %v1009_v28 }
 0x2f9   : > { %v1187_v32 = vpop.f32.mrb[2].mxu0  ;;  %v1186_v36 = vadd.f32 %v1185_v31, %v1013_v30 }
 0x2fa   : > { %v1188_v34 = vadd.f32 %v1187_v32, %v1009_v28  ;;  %v1189_v35 = vpop.f32.mrb[3].mxu0 }
 0x2fb   : > { %v1190_v37 = vadd.f32 %v1189_v35, %v1013_v30 }
 0x2fc   : > { %v5248_v38 = vpack.c.bf16 %v1188_v34, %v1184_v33 }
 0x2fd   : > { %v5250_v39 = vpack.c.bf16 %v1190_v37, %v1186_v36  ;;  %v1226_v17 = vpop.f32.mrb[0].mxu1 }
 0x2fe   : > { %v3465_v18 = vpop.f32.mrb[1].mxu1  ;;  %v1227_v29 = vadd.f32 %v1226_v17, %v1017_v21 }
 0x2ff   : > { %1372 = vrot.lane.b32.xlu0 %v5250_v39, %s4453_s19  ;;  %v1242_v40 = vsel %vm1237_vm1, %v5250_v39, 0  ;;  %v1229_v23 = vpop.f32.mrb[2].mxu1 }
 0x300   : > { %3468 = vmatpush3.bf16.xpose.msra.mxu0 %v1242_v40  ;;  %v3466_v28 = vpop.f32.mrb[3].mxu1  ;;  %v1230_v30 = vadd.f32 %v1229_v23, %v1017_v21 }
 0x301   : > { %3479 = vmatprep.subr.bf16.mxu0 %v4451_v22 }
 0x302   : > { %v5305_v31 = vpack.c.bf16 %v1230_v30, %v1227_v29 }
 0x303   : > { %1369 = vrot.lane.b32.xlu0 %v5248_v38, %s4453_s19 }
 0x304   : > { %3474 = vmatpush3.bf16.msra.mxu1 %v5305_v31 }
 0x305   : > { %3485 = vmatprep.subr.bf16.mxu1 %v4451_v22 }
 0x307   : > { %3470 = vmatmul.mubr.msk.bf16.vlgmr.msra.gmra.mrb[4].mxu0 %vm1237_vm1, %v5248_v38 }
 0x308   : > { %3481 = vmatprep.mubr.msk.bf16.mxu0 %vm4452_vm0, %v4451_v22 }
 0x371   : > { %v1373_v45 = vpop.permute.xlu0 %1372 }
 0x372   : > { %v1378_v46 = vsel %vm1237_vm1, %v1373_v45, 0 }
 0x373   : > { %3480 = vmatpush3.bf16.xpose.msra.mxu0 %v1378_v46 }
 0x374   : > { %3491 = vmatprep.subr.bf16.mxu0 %v4451_v22 }
 0x375   : > { %v1370_v49 = vpop.permute.xlu0 %1369 }
 0x37a   : > { %3482 = vmatmul.mubr.msk.bf16.vlgmr.msra.gmra.mrb[8].mxu0 %vm1237_vm1, %v1370_v49 }
 0x37b   : > { %3495 = vmatprep.mubr.msk.bf16.mxu0 %vm4452_vm0, %v4451_v22 }
 0x3da   : > { %v1278_v52 = vpop.f32.mrb[4].mxu0 }
 0x3db   : > { %v1285_v54 = vmul.f32 0.17677669, %v1278_v52  ;;  %v3471_v55 = vpop.f32.mrb[5].mxu0 }
 0x3dc   : > { %v1281_v56 = vpop.f32.mrb[6].mxu0  ;;  %v3725_v55 = vld [vmem:[%s5156_s0 + $0x10] sm:$0xff]  }
 0x3dd   : > { %v1286_v57 = vmul.f32 0.17677669, %v1281_v56  ;;  %v3472_v58 = vpop.f32.mrb[7].mxu0  ;;  %v1293_v59 = vadd.f32 %v5289_v53, %v1285_v54  ;;  %3492 = vmatpush3.bf16.msra.mxu0 %v3725_v55  ;;  %v3726_v56 = vld [vmem:[%s5156_s0 + $0x18] sm:$0xff]  }
 0x3de   : > { %3493 = vmatprep.subr.bf16.mxu0 %v4451_v22 }
 0x3df   : > { %v1296_v60 = vsel %vm1295_vm2, %v1293_v59, -inf  ;;  %v1294_v61 = vadd.f32 %v5289_v53, %v1286_v57 }
 0x3e0   : > { %1297 = vmax.xlane.f32.xlu1 %v1296_v60 }
 0x3e1   : > { %v1299_v62 = vsel %vm1295_vm2, %v1294_v61, -inf  ;;  %3494 = vmatpush3.bf16.msra.mxu0 %v3726_v56 }
 0x3e2   : > { %3507 = vmatprep.subr.bf16.mxu0 %v4451_v22 }
 0x3e4   : > { %1300 = vmax.xlane.f32.xlu1 %v1299_v62 }
 0x44d   : > { %v1414_v63 = vpop.f32.mrb[8].mxu0 }
 0x44e   : > { %v1421_v0 = vmul.f32 0.17677669, %v1414_v63  ;;  %v3483_v1 = vpop.f32.mrb[9].mxu0 }
 0x44f   : > { %v1417_v2 = vpop.f32.mrb[10].mxu0 }
 0x450   : > { %v1422_v3 = vmul.f32 0.17677669, %v1417_v2  ;;  %v3484_v5 = vpop.f32.mrb[11].mxu0  ;;  %v1423_v6 = vadd.f32 %v5289_v53, %v1421_v0  ;;  %v3723_v0 = vld [vmem:[%s5156_s0] sm:$0xff]   ;;  %v3724_v2 = vld [vmem:[%s5156_s0 + $0x8] sm:$0xff]  }
 0x452   : > { %v1425_v7 = vsel %vm1295_vm2, %v1423_v6, -inf  ;;  %v1424_v8 = vadd.f32 %v5289_v53, %v1422_v3 }
 0x453   : > { %1426 = vmax.xlane.f32.xlu0 %v1425_v7 }
 0x454   : > { %v1428_v9 = vsel %vm1295_vm2, %v1424_v8, -inf }
 0x455   : > { %1429 = vmax.xlane.f32.xlu1 %v1428_v9 }
 0x469   : > { %1615 = vrot.lane.b32.xlu0 %v5250_v39, %s4454_s13 }
 0x46d   : > { %v1298_v10 = vpop.xlane.xlu1 %1297 }
 0x46e   : > { %v1302_v11 = vsub.f32 %v1293_v59, %v1298_v10 }
 0x470   : > { %v1304_v12 = vmul.f32 1.442695, %v1302_v11 }
 0x471   : > { %v1301_v13 = vpop.xlane.xlu1 %1300 }
 0x472   : > { %3811 = vpow2.f32 %v1304_v12  ;;  %v1303_v14 = vsub.f32 %v1294_v61, %v1301_v13 }
 0x474   : > { %v1306_v15 = vmul.f32 1.442695, %v1303_v14 }
 0x476   : > { %3813 = vpow2.f32 %v1306_v15 }
 0x47c   : > { %v3812_v32 = vpop.eup %3811 }
 0x47d   : > { %v1308_v33 = vsel %vm1295_vm2, %v3812_v32, 0.0 }
 0x47e   : > { %1309 = vadd.xlane.f32.xlu1 %v1308_v33 }
 0x480   : > { %v3814_v34 = vpop.eup %3813 }
 0x481   : > { %v1311_v35 = vsel %vm1295_vm2, %v3814_v34, 0.0 }
 0x482   : > { %1312 = vadd.xlane.f32.xlu1 %v1311_v35 }
 0x4e0   : > { %v1427_v36 = vpop.xlane.xlu0 %1426 }
 0x4e1   : > { %v1431_v26 = vsub.f32 %v1423_v6, %v1427_v36 }
 0x4e2   : > { %v1430_v37 = vpop.xlane.xlu1 %1429 }
 0x4e3   : > { %v1433_v40 = vmul.f32 1.442695, %v1431_v26  ;;  %v1432_v41 = vsub.f32 %v1424_v8, %v1430_v37 }
 0x4e4   : > { %v1616_v11 = vpop.permute.xlu0 %1615 }
 0x4e5   : > { %3815 = vpow2.f32 %v1433_v40  ;;  %v1435_v42 = vmul.f32 1.442695, %v1432_v41  ;;  %v1621_v15 = vsel %vm1237_vm1, %v1616_v11, 0 }
 0x4e7   : > { %3817 = vpow2.f32 %v1435_v42 }
 0x4ef   : > { %v3816_v43 = vpop.eup %3815 }
 0x4f0   : > { %v1437_v44 = vsel %vm1295_vm2, %v3816_v43, 0.0 }
 0x4f1   : > { %v3818_v45 = vpop.eup %3817  ;;  %1438 = vadd.xlane.f32.xlu1 %v1437_v44 }
 0x4f2   : > { %v1440_v46 = vsel %vm1295_vm2, %v3818_v45, 0.0 }
 0x4f5   : > { %1441 = vadd.xlane.f32.xlu1 %v1440_v46 }
 0x506   : > { %1449 = vrot.lane.b32.xlu1 %v5305_v31, %s4453_s19 }
 0x50a   : > { %1613 = vrot.lane.b32.xlu1 %v5248_v38, %s4454_s13 }
 0x50b   : > { %v1310_v47 = vpop.xlane.xlu1 %1309 }
 0x50c   : > { %3819 = vrcp.f32 %v1310_v47 }
 0x50f   : > { %v1313_v48 = vpop.xlane.xlu1 %1312 }
 0x510   : > { %3821 = vrcp.f32 %v1313_v48 }
 0x516   : > { %v3820_v49 = vpop.eup %3819 }
 0x517   : > { %v1316_v51 = vmul.f32 %v3820_v49, %v3812_v32 }
 0x51a   : > { %v3822_v50 = vpop.eup %3821 }
 0x51b   : > { %v1317_v52 = vmul.f32 %v3822_v50, %v3814_v34 }
 0x51d   : > { %v1318_v54 = vpack.c.bf16 %v1317_v52, %v1316_v51 }
 0x51f   : > { %3476 = vmatmul.mubr.msk.bf16.vlgmr.msra.gmra.mrb[4].mxu1 %vm1295_vm2, %v1318_v54 }
 0x520   : > { %3487 = vmatprep.mubr.msk.bf16.mxu1 %vm4452_vm0, %v4451_v22 }
 0x57e   : > { %v1439_v57 = vpop.xlane.xlu1 %1438 }
 0x57f   : > { %3823 = vrcp.f32 %v1439_v57 }
 0x582   : > { %v1442_v58 = vpop.xlane.xlu1 %1441 }
 0x583   : > { %3825 = vrcp.f32 %v1442_v58 }
 0x586   : > { %v1450_v59 = vpop.permute.xlu1 %1449 }
 0x587   : > { %3486 = vmatpush3.bf16.msra.mxu1 %v1450_v59  ;;  %v3727_v59 = vld [vmem:[%s5156_s0 + $0x20] sm:$0xff]  }
 0x588   : > { %3499 = vmatprep.subr.bf16.mxu1 %v4451_v22 }
 0x589   : > { %v3824_v60 = vpop.eup %3823 }
 0x58a   : > { %v1445_v62 = vmul.f32 %v3824_v60, %v3816_v43  ;;  %v1614_v17 = vpop.permute.xlu1 %1613 }
 0x58d   : > { %v3826_v61 = vpop.eup %3825 }
 0x58e   : > { %v1446_v63 = vmul.f32 %v3826_v61, %v3818_v45 }
 0x590   : > { %v1447_v1 = vpack.c.bf16 %v1446_v63, %v1445_v62 }
 0x592   : > { %3488 = vmatmul.mubr.msk.bf16.vlgmr.msra.gmra.mrb[8].mxu1 %vm1295_vm2, %v1447_v1 }
 0x593   : > { %3500 = vmatpush3.bf16.msra.mxu1 %v3723_v0  ;;  %3503 = vmatprep.mubr.msk.bf16.mxu1 %vm4452_vm0, %v4451_v22 }
 0x594   : > { %3501 = vmatprep.subr.bf16.mxu1 %v4451_v22 }
 0x597   : > { %3502 = vmatpush3.bf16.msra.mxu1 %v3724_v2 }
 0x598   : > { %3513 = vmatprep.subr.bf16.mxu1 %v4451_v22 }
 0x5f2   : > { %v1356_v3 = vpop.f32.mrb[4].mxu1 }
 0x5f3   : > { %v3477_v5 = vpop.f32.mrb[5].mxu1 }
 0x5f4   : > { %v1359_v6 = vpop.f32.mrb[6].mxu1  ;;  %v3728_v5 = vld [vmem:[%s5156_s0 + $0x28] sm:$0xff]  }
 0x5f5   : > { %v1363_v7 = vpack.c.bf16 %v1359_v6, %v1356_v3  ;;  %v3478_v8 = vpop.f32.mrb[7].mxu1 }
 0x5f7   : > { %3504 = vmatmul.mubr.msk.bf16.vlgmr.msra.gmra.mrb[12].mxu1 %vm1237_vm1, %v1363_v7 }
 0x5f8   : > { %3515 = vmatprep.mubr.msk.bf16.mxu1 %vm4452_vm0, %v4451_v22 }
 0x665   : > { %v1489_v9 = vpop.f32.mrb[8].mxu1 }
 0x666   : > { %v3489_v10 = vpop.f32.mrb[9].mxu1 }
 0x667   : > { %v1492_v12 = vpop.f32.mrb[10].mxu1 }
 0x668   : > { %v1496_v13 = vpack.c.bf16 %v1492_v12, %v1489_v9  ;;  %v3490_v14 = vpop.f32.mrb[11].mxu1 }
 0x66a   : > { %3496 = vmatmul.mubr.msk.bf16.vlgmr.msra.gmra.mrb[12].mxu0 %vm1237_vm1, %v1496_v13 }
 0x66b   : > { %3508 = vmatpush3.bf16.xpose.msra.mxu0 %v1621_v15  ;;  %3509 = vmatprep.mubr.msk.bf16.mxu0 %vm4452_vm0, %v4451_v22 }
 0x66c   : > { %3519 = vmatprep.subr.bf16.mxu0 %v4451_v22 }
 0x672   : > { %3510 = vmatmul.mubr.msk.bf16.vlgmr.msra.gmra.mrb[16].mxu0 %vm1237_vm1, %v1614_v17 }
 0x673   : > { %3523 = vmatprep.mubr.msk.bf16.mxu0 %vm4452_vm0, %v4451_v22  ;;  %3520 = vmatpush3.bf16.msra.mxu0 %v3727_v59 }
 0x674   : > { %3521 = vmatprep.subr.bf16.mxu0 %v4451_v22 }
 0x677   : > { %3522 = vmatpush3.bf16.msra.mxu0 %v3728_v5  ;;  %v3731_v5 = vld [vmem:[%s5173_s14] ss:$16 sps:$4 sm:$0xff]  }
 0x678   : > { %3533 = vmatprep.subr.bf16.mxu0 %v4451_v22 }
 0x6ca   : > { %v1606_v18 = vpop.f32.mrb[12].mxu1 }
 0x6cb   : > { %v3505_v21 = vpop.f32.mrb[13].mxu1 }
 0x6cc   : > { %v1609_v23 = vpop.f32.mrb[14].mxu1 }
 0x6cd   : > { %v3506_v28 = vpop.f32.mrb[15].mxu1 }
 0x73d   : > { %v1550_v29 = vpop.f32.mrb[12].mxu0 }
 0x73e   : > { %v5343_v30 = vadd.f32 %v1606_v18, %v1550_v29  ;;  %v3497_v32 = vpop.f32.mrb[13].mxu0 }
 0x73f   : > { %v1553_v33 = vpop.f32.mrb[14].mxu0 }
 0x740   : > { %v5345_v34 = vadd.f32 %v1609_v23, %v1553_v33  ;;  %v3498_v35 = vpop.f32.mrb[15].mxu0 }
 0x745   : > { %v1657_v36 = vpop.f32.mrb[16].mxu0 }
 0x746   : > { %v1664_v26 = vmul.f32 0.17677669, %v1657_v36  ;;  %v3511_v37 = vpop.f32.mrb[17].mxu0 }
 0x747   : > { %v1660_v40 = vpop.f32.mrb[18].mxu0 }
 0x748   : > { %v1665_v41 = vmul.f32 0.17677669, %v1660_v40  ;;  %v3512_v42 = vpop.f32.mrb[19].mxu0  ;;  %v1666_v43 = vadd.f32 %v5289_v53, %v1664_v26 }
 0x74a   : > { %v1668_v44 = vsel %vm1295_vm2, %v1666_v43, -inf  ;;  %v1667_v45 = vadd.f32 %v5289_v53, %v1665_v41 }
 0x74b   : > { %1669 = vmax.xlane.f32.xlu1 %v1668_v44 }
 0x74c   : > { %v1671_v46 = vsel %vm1295_vm2, %v1667_v45, -inf }
 0x74d   : > { %1672 = vmax.xlane.f32.xlu0 %v1671_v46 }
 0x763   : > { %1691 = vrot.lane.b32.xlu0 %v5305_v31, %s4454_s13 }
 0x7d8   : > { %v1670_v47 = vpop.xlane.xlu1 %1669 }
 0x7d9   : > { %v1674_v48 = vsub.f32 %v1666_v43, %v1670_v47 }
 0x7da   : > { %v1673_v49 = vpop.xlane.xlu0 %1672 }
 0x7db   : > { %v1676_v50 = vmul.f32 1.442695, %v1674_v48  ;;  %v1675_v51 = vsub.f32 %v1667_v45, %v1673_v49 }
 0x7dd   : > { %3827 = vpow2.f32 %v1676_v50  ;;  %v1678_v52 = vmul.f32 1.442695, %v1675_v51 }
 0x7de   : > { %v1692_v54 = vpop.permute.xlu0 %1691 }
 0x7df   : > { %3829 = vpow2.f32 %v1678_v52  ;;  %3514 = vmatpush3.bf16.msra.mxu1 %v1692_v54 }
 0x7e0   : > { %3527 = vmatprep.subr.bf16.mxu1 %v4451_v22 }
 0x7e7   : > { %v3828_v55 = vpop.eup %3827 }
 0x7e8   : > { %v1680_v56 = vsel %vm1295_vm2, %v3828_v55, 0.0 }
 0x7e9   : > { %v3830_v57 = vpop.eup %3829  ;;  %1681 = vadd.xlane.f32.xlu1 %v1680_v56 }
 0x7ea   : > { %v1683_v58 = vsel %vm1295_vm2, %v3830_v57, 0.0 }
 0x7ed   : > { %1684 = vadd.xlane.f32.xlu1 %v1683_v58 }
 0x7fe   : > { %1803 = vrot.lane.b32.xlu1 %v5250_v39, %s4455_s27 }
 0x802   : > { %1801 = vrot.lane.b32.xlu1 %v5248_v38, %s4455_s27 }
 0x876   : > { %v1682_v60 = vpop.xlane.xlu1 %1681 }
 0x877   : > { %3831 = vrcp.f32 %v1682_v60 }
 0x87a   : > { %v1685_v61 = vpop.xlane.xlu1 %1684 }
 0x87b   : > { %3833 = vrcp.f32 %v1685_v61  ;;  %v3285_v61 = vld [vmem:[%s5729_s11] ss:$0 sm:$0xff] }
 0x87e   : > { %v1804_v2 = vpop.permute.xlu1 %1803 }
 0x87f   : > { %v1809_v39 = vsel %vm1237_vm1, %v1804_v2, 0 }
 0x881   : > { %v3832_v62 = vpop.eup %3831 }
 0x882   : > { %v1688_v0 = vmul.f32 %v3832_v62, %v3828_v55  ;;  %v1802_v38 = vpop.permute.xlu1 %1801 }
 0x885   : > { %v3834_v63 = vpop.eup %3833 }
 0x886   : > { %v1689_v1 = vmul.f32 %v3834_v63, %v3830_v57 }
 0x888   : > { %v1690_v3 = vpack.c.bf16 %v1689_v1, %v1688_v0 }
 0x88a   : > { %3516 = vmatmul.mubr.msk.bf16.vlgmr.msra.gmra.mrb[16].mxu1 %vm1295_vm2, %v1690_v3 }
 0x88b   : > { %3528 = vmatpush3.bf16.xpose.msra.mxu1 %v1809_v39  ;;  %3529 = vmatprep.mubr.msk.bf16.mxu1 %vm4452_vm0, %v4451_v22 }
 0x88c   : > { %3539 = vmatprep.subr.bf16.mxu1 %v4451_v22 }
 0x892   : > { %3530 = vmatmul.mubr.msk.bf16.vlgmr.msra.gmra.mrb[20].mxu1 %vm1237_vm1, %v1802_v38 }
 0x893   : > { %3543 = vmatprep.mubr.msk.bf16.mxu1 %vm4452_vm0, %v4451_v22 }
 0x95d   : > { %v1731_v6 = vpop.f32.mrb[16].mxu1 }
 0x95e   : > { %v3517_v7 = vpop.f32.mrb[17].mxu1 }
 0x95f   : > { %v1734_v8 = vpop.f32.mrb[18].mxu1  ;;  %v3734_v7 = vld [vmem:[%s5173_s14 + $0x8] ss:$16 sps:$4 sm:$0xff]  }
 0x960   : > { %v1738_v9 = vpack.c.bf16 %v1734_v8, %v1731_v6  ;;  %v3518_v10 = vpop.f32.mrb[19].mxu1  ;;  %v3733_v6 = vld [vmem:[%s5173_s14 + $0x4] ss:$16 sps:$4 sm:$0xff]   ;;  %v3736_v8 = vld [vmem:[%s5173_s14 + $0xc] ss:$16 sps:$4 sm:$0xff]  }
 0x961   : > { %v3742_v10 = vld [vmem:[%s5173_s14 + $0x2c] ss:$16 sps:$4 sm:$0xff]  }
 0x962   : > { %3524 = vmatmul.mubr.msk.bf16.vlgmr.msra.gmra.mrb[20].mxu0 %vm1237_vm1, %v1738_v9  ;;  %v3739_v9 = vld [vmem:[%s5173_s14 + $0x24] ss:$16 sps:$4 sm:$0xff]  }
 0x963   : > { %3535 = vmatprep.mubr.msk.bf16.mxu0 %vm4452_vm0, %v4451_v22 }
 0x965   : > { %v1845_v11 = vpop.f32.mrb[20].mxu1 }
 0x966   : > { %v1852_v12 = vmul.f32 0.17677669, %v1845_v11  ;;  %v3531_v13 = vpop.f32.mrb[21].mxu1  ;;  %v3737_v11 = vld [vmem:[%s5173_s14 + $0x20] ss:$16 sps:$4 sm:$0xff]  }
 0x967   : > { %v1848_v14 = vpop.f32.mrb[22].mxu1 }
 0x968   : > { %v1853_v15 = vmul.f32 0.17677669, %v1848_v14  ;;  %v3532_v17 = vpop.f32.mrb[23].mxu1  ;;  %v1854_v18 = vadd.f32 %v5289_v53, %v1852_v12 }
 0x96a   : > { %v1856_v21 = vsel %vm1295_vm2, %v1854_v18, -inf  ;;  %v1855_v23 = vadd.f32 %v5289_v53, %v1853_v15 }
 0x96b   : > { %1857 = vmax.xlane.f32.xlu0 %v1856_v21 }
 0x96c   : > { %v1859_v28 = vsel %vm1295_vm2, %v1855_v23, -inf }
 0x96d   : > { %1860 = vmax.xlane.f32.xlu1 %v1859_v28  ;;  %v3748_v28 = vld [vmem:[%s5173_s14 + $0x4c] ss:$16 sps:$4 sm:$0xff]  }
 0x97e   : > { %1879 = vrot.lane.b32.xlu1 %v5305_v31, %s4455_s27  ;;  %v3729_v31 = vld [vmem:[%s5156_s0 + $0x30] sm:$0xff]  }
 0x97f   : > { %3540 = vmatpush3.bf16.msra.mxu1 %v3729_v31  ;;  %v3766_v31 = vld [vmem:[%s5173_s14 + $0xac] ss:$16 sps:$4 sm:$0xff]  }
 0x980   : > { %3541 = vmatprep.subr.bf16.mxu1 %v4451_v22  ;;  %v3730_v22 = vld [vmem:[%s5156_s0 + $0x38] sm:$0xff]   ;;  %s5730_s0 = scalar_lea.vmem [#allocation16], %s5138_s29 }
 0x983   : > { %3542 = vmatpush3.bf16.msra.mxu1 %v3730_v22 }
 0x984   : > { %2299 = vmatprep.subr.bf16.mxu1 %v3736_v8  ;;  %v3785_v8 = vld [vmem:[%s5182_s15 + $0x8] sm:$0xff]  }
 0x9f8   : > { %v1858_v29 = vpop.xlane.xlu0 %1857 }
 0x9f9   : > { %v1862_v32 = vsub.f32 %v1854_v18, %v1858_v29  ;;  %v3743_v29 = vld [vmem:[%s5173_s14 + $0x40] ss:$16 sps:$4 sm:$0xff]  }
 0x9fa   : > { %v1861_v33 = vpop.xlane.xlu1 %1860 }
 0x9fb   : > { %v1864_v35 = vmul.f32 1.442695, %v1862_v32  ;;  %v1863_v36 = vsub.f32 %v1855_v23, %v1861_v33  ;;  %v3745_v23 = vld [vmem:[%s5173_s14 + $0x44] ss:$16 sps:$4 sm:$0xff]   ;;  %v3746_v32 = vld [vmem:[%s5173_s14 + $0x48] ss:$16 sps:$4 sm:$0xff]  }
 0x9fc   : > { %v3751_v33 = vld [vmem:[%s5173_s14 + $0x64] ss:$16 sps:$4 sm:$0xff]  }
 0x9fd   : > { %3835 = vpow2.f32 %v1864_v35  ;;  %v1866_v26 = vmul.f32 1.442695, %v1863_v36  ;;  %v3754_v35 = vld [vmem:[%s5173_s14 + $0x6c] ss:$16 sps:$4 sm:$0xff]   ;;  %v3749_v36 = vld [vmem:[%s5173_s14 + $0x60] ss:$16 sps:$4 sm:$0xff]  }
 0x9fe   : > { %v1880_v37 = vpop.permute.xlu1 %1879 }
 0x9ff   : > { %3837 = vpow2.f32 %v1866_v26  ;;  %3534 = vmatpush3.bf16.msra.mxu0 %v1880_v37  ;;  %v3752_v26 = vld [vmem:[%s5173_s14 + $0x68] ss:$16 sps:$4 sm:$0xff]   ;;  %v3757_v37 = vld [vmem:[%s5173_s14 + $0x84] ss:$16 sps:$4 sm:$0xff]  }
 0xa00   : > { %2256 = vmatprep.subr.bf16.mxu0 %v3733_v6  ;;  %v3783_v6 = vld [vmem:[%s5182_s15 + $0x48] sm:$0xff]  }
 0xa07   : > { %v3836_v40 = vpop.eup %3835 }
 0xa08   : > { %v1868_v53 = vsel %vm1295_vm2, %v3836_v40, 0.0 }
 0xa09   : > { %v3838_v41 = vpop.eup %3837  ;;  %1869 = vadd.xlane.f32.xlu0 %v1868_v53  ;;  %v3755_v53 = vld [vmem:[%s5173_s14 + $0x80] ss:$16 sps:$4 sm:$0xff]  }
 0xa0a   : > { %v1871_v42 = vsel %vm1295_vm2, %v3838_v41, 0.0 }
 0xa0d   : > { %1872 = vadd.xlane.f32.xlu0 %v1871_v42  ;;  %v3763_v42 = vld [vmem:[%s5173_s14 + $0xa4] ss:$16 sps:$4 sm:$0xff]  }
 0xa35   : > { %v1792_v43 = vpop.f32.mrb[20].mxu0 }
 0xa36   : > { %v1799_v44 = vadd.f32 %v1792_v43, %v5343_v30  ;;  %v3525_v45 = vpop.f32.mrb[21].mxu0  ;;  %v3761_v43 = vld [vmem:[%s5173_s14 + $0xa0] ss:$16 sps:$4 sm:$0xff]  }
 0xa37   : > { %v1795_v46 = vpop.f32.mrb[22].mxu0  ;;  %v3769_v45 = vld [vmem:[%s5173_s14 + $0xc4] ss:$16 sps:$4 sm:$0xff]  }
 0xa38   : > { %v1800_v47 = vadd.f32 %v1795_v46, %v5345_v34  ;;  %v3526_v48 = vpop.f32.mrb[23].mxu0  ;;  %v3772_v46 = vld [vmem:[%s5173_s14 + $0xcc] ss:$16 sps:$4 sm:$0xff]  }
 0xa39   : > { %v3770_v48 = vld [vmem:[%s5173_s14 + $0xc8] ss:$16 sps:$4 sm:$0xff]  }
 0xa96   : > { %v1870_v49 = vpop.xlane.xlu0 %1869 }
 0xa97   : > { %3839 = vrcp.f32 %v1870_v49  ;;  %v3775_v49 = vld [vmem:[%s5173_s14 + $0xe4] ss:$16 sps:$4 sm:$0xff]  }
 0xa9a   : > { %v1873_v50 = vpop.xlane.xlu0 %1872 }
 0xa9b   : > { %3841 = vrcp.f32 %v1873_v50  ;;  %v3778_v50 = vld [vmem:[%s5173_s14 + $0xec] ss:$16 sps:$4 sm:$0xff]  }
 0xaa1   : > { %v3840_v51 = vpop.eup %3839 }
 0xaa2   : > { %v1876_v54 = vmul.f32 %v3840_v51, %v3836_v40  ;;  %v3760_v40 = vld [vmem:[%s5173_s14 + $0x8c] ss:$16 sps:$4 sm:$0xff]   ;;  %v3773_v51 = vld [vmem:[%s5173_s14 + $0xe0] ss:$16 sps:$4 sm:$0xff]  }
 0xaa5   : > { %v3842_v52 = vpop.eup %3841 }
 0xaa6   : > { %v1877_v55 = vmul.f32 %v3842_v52, %v3838_v41  ;;  %v3758_v41 = vld [vmem:[%s5173_s14 + $0x88] ss:$16 sps:$4 sm:$0xff]  }
 0xaa7   : > { %v3776_v52 = vld [vmem:[%s5173_s14 + $0xe8] ss:$16 sps:$4 sm:$0xff]  }
 0xaa8   : > { %v1878_v56 = vpack.c.bf16 %v1877_v55, %v1876_v54 }
 0xaaa   : > { %3536 = vmatmul.mubr.msk.bf16.vlgmr.msra.gmra.mrb[24].mxu0 %vm1295_vm2, %v1878_v56 }
 0xaab   : > { %2288 = vmatprep.mubr.bf16.mxu0 %v4450_v4  ;;  %2257 = vmatpush1.bf16.msra.mxu0 %v3731_v5  ;;  %v3782_v5 = vld [vmem:[%s5182_s15 + $0x80] sm:$0xff]  }
 0xaac   : > { %2258 = vmatprep.subr.bf16.mxu0 %v3739_v9  ;;  %v3786_v9 = vld [vmem:[%s5182_s15 + $0x88] sm:$0xff]  }
 0xaaf   : > { %2259 = vmatpush1.bf16.msra.mxu0 %v3737_v11  ;;  %v3788_v11 = vld [vmem:[%s5182_s15 + $0xd0] sm:$0xff]  }
 0xab0   : > { %2260 = vmatprep.subr.bf16.mxu0 %v3745_v23  ;;  %v3798_v23 = vld [vmem:[%s5182_s15 + $0xa0] sm:$0xff]  }
 0xab3   : > { %2261 = vmatpush1.bf16.msra.mxu0 %v3743_v29  ;;  %v3800_v29 = vld [vmem:[%s5182_s15 + $0xe8] sm:$0xff]  }
 0xab4   : > { %2262 = vmatprep.subr.bf16.mxu0 %v3751_v33  ;;  %v3802_v33 = vld [vmem:[%s5182_s15 + $0xa8] sm:$0xff]  }
 0xab7   : > { %2263 = vmatpush1.bf16.msra.mxu0 %v3749_v36  ;;  %v3804_v36 = vld [vmem:[%s5182_s15 + $0xf0] sm:$0xff]  }
 0xab8   : > { %2264 = vmatprep.subr.bf16.mxu0 %v3757_v37  ;;  %v3806_v37 = vld [vmem:[%s5182_s15 + $0xb0] sm:$0xff]  }
 0xabb   : > { %2265 = vmatpush1.bf16.msra.mxu0 %v3755_v53  ;;  %v3808_v53 = vld [vmem:[%s5182_s15 + $0xf8] sm:$0xff]  }
 0xabc   : > { %2266 = vmatprep.subr.bf16.mxu0 %v3763_v42  ;;  %v3810_v42 = vld [vmem:[%s5182_s15 + $0xb8] sm:$0xff]  }
 0xabf   : > { %2267 = vmatpush1.bf16.msra.mxu0 %v3761_v43  ;;  %v2090_v43 = vsub.s32 3, %v5235_v24 }
 0xac0   : > { %2268 = vmatprep.subr.bf16.mxu0 %v3769_v45 }
 0xb7d   : > { %v1919_v30 = vpop.f32.mrb[24].mxu0 }
 0xb7e   : > { %v3537_v57 = vpop.f32.mrb[25].mxu0 }
 0xb7f   : > { %v1922_v34 = vpop.f32.mrb[26].mxu0 }
 0xb80   : > { %v1926_v58 = vpack.c.bf16 %v1922_v34, %v1919_v30  ;;  %v3538_v59 = vpop.f32.mrb[27].mxu0 }
 0xb81   : > { %v3286_v59 = vld [vmem:[%s5730_s0] ss:$0 sm:$0xff] }
 0xb82   : > { %3544 = vmatmul.mubr.msk.bf16.vlgmr.msra.gmra.mrb[24].mxu1 %vm1237_vm1, %v1926_v58 }
 0xb83   : > { %2331 = vmatprep.mubr.bf16.mxu1 %v4450_v4  ;;  %2300 = vmatpush1.bf16.msra.mxu1 %v3734_v7  ;;  %v3784_v7 = vld [vmem:[%s5182_s15 + $0xc8] sm:$0xff]  }
 0xb84   : > { %2301 = vmatprep.subr.bf16.mxu1 %v3742_v10  ;;  %v3787_v10 = vld [vmem:[%s5182_s15 + $0x50] sm:$0xff]  }
 0xc55   : > { %v1980_v60 = vpop.f32.mrb[24].mxu1 }
 0xc56   : > { %v1987_v62 = vadd.f32 %v1980_v60, %v1799_v44  ;;  %v3545_v63 = vpop.f32.mrb[25].mxu1  ;;  %v3764_v44 = vld [vmem:[%s5173_s14 + $0xa8] ss:$16 sps:$4 sm:$0xff]  }
 0xc57   : > { %v1983_v0 = vpop.f32.mrb[26].mxu1  ;;  %v3287_v63 = vld [vmem:[%s5731_s24] ss:$0 sm:$0xff] }
 0xc58   : > { %v1996_v1 = vadd.f32 %v3285_v61, %v1987_v62  ;;  %v1988_v2 = vadd.f32 %v1983_v0, %v1800_v47  ;;  %v3546_v3 = vpop.f32.mrb[27].mxu1  ;;  %v3767_v47 = vld [vmem:[%s5173_s14 + $0xc0] ss:$16 sps:$4 sm:$0xff]  }
 0xc59   : > { %2269 = vmatpush1.bf16.msra.mxu0 %v3767_v47 }
 0xc5a   : > { %v1997_v39 = vadd.f32 %v3285_v61, %v1988_v2  ;;  %v1998_v38 = vadd.f32 %v1996_v1, %v5220_v19  ;;  %v3740_v19 = vld [vmem:[%s5173_s14 + $0x28] ss:$16 sps:$4 sm:$0xff]   ;;  %2270 = vmatprep.subr.bf16.mxu0 %v3775_v49 }
 0xc5b   : > { %2302 = vmatpush1.bf16.msra.mxu1 %v3740_v19  ;;  %v3789_v19 = vld [vmem:[%s5182_s15 + $0x10] sm:$0xff]  }
 0xc5c   : > { %2002 = vadd.xlane.f32.xlu0 %v1998_v38  ;;  %v1999_v4 = vadd.f32 %v1997_v39, %v5222_v20  ;;  %2303 = vmatprep.subr.bf16.mxu1 %v3748_v28  ;;  %v3779_v39 = vld [vmem:[%s5182_s15 + $0x40] sm:$0xff]   ;;  %v3799_v28 = vld [vmem:[%s5182_s15 + $0x68] sm:$0xff]  }
 0xc5d   : > { %2271 = vmatpush1.bf16.msra.mxu0 %v3773_v51 }
 0xc5e   : > { %3403 = vmatprep.subr.bf16.mxu0 %v3779_v39 }
 0xc5f   : > { %2304 = vmatpush1.bf16.msra.mxu1 %v3746_v32  ;;  %v3801_v32 = vld [vmem:[%s5182_s15 + $0x28] sm:$0xff]  }
 0xc60   : > { %2004 = vadd.xlane.f32.xlu0 %v1999_v4  ;;  %2305 = vmatprep.subr.bf16.mxu1 %v3754_v35  ;;  %v3803_v35 = vld [vmem:[%s5182_s15 + $0x70] sm:$0xff]  }
 0xc63   : > { %2306 = vmatpush1.bf16.msra.mxu1 %v3752_v26  ;;  %v3805_v26 = vld [vmem:[%s5182_s15 + $0x30] sm:$0xff]  }
 0xc64   : > { %2307 = vmatprep.subr.bf16.mxu1 %v3760_v40  ;;  %v3807_v40 = vld [vmem:[%s5182_s15 + $0x78] sm:$0xff]  }
 0xc67   : > { %2308 = vmatpush1.bf16.msra.mxu1 %v3758_v41  ;;  %v3809_v41 = vld [vmem:[%s5182_s15 + $0x38] sm:$0xff]  }
 0xc68   : > { %2309 = vmatprep.subr.bf16.mxu1 %v3766_v31  ;;  %v2074_v31 = vld [vmem:[%s5176_s1] sm:$0xf] }
 0xc69   : > { %v2087_v45 = vrot.slane %v2074_v31, %v1016_v16  ;;  %v2091_v47 = vrot.slane %v2074_v31, %v2090_v43 }
 0xc6b   : > { %2310 = vmatpush1.bf16.msra.mxu1 %v3764_v44  ;;  %v2079_v44 = vrot.slane %v2074_v31, %v1008_v25 }
 0xc6c   : > { %2311 = vmatprep.subr.bf16.mxu1 %v3772_v46  ;;  %v2083_v46 = vrot.slane %v2074_v31, %v1012_v27 }
 0xc6f   : > { %2312 = vmatpush1.bf16.msra.mxu1 %v3770_v48 }
 0xc70   : > { %2313 = vmatprep.subr.bf16.mxu1 %v3778_v50 }
 0xc73   : > { %2314 = vmatpush1.bf16.msra.mxu1 %v3776_v52 }
 0xce9   : > { %v2003_v20 = vpop.xlane.xlu0 %2002 }
 0xcea   : > { %v2007_v12 = vmul.f32 0.0078125, %v2003_v20  ;;  %v3790_v20 = vld [vmem:[%s5182_s15 + $0x90] sm:$0xff]  }
 0xcec   : > { %v5404_v13 = vsub.f32 %v1998_v38, %v2007_v12  ;;  %v3780_v38 = vld [vmem:[%s5182_s15 + $0xc0] sm:$0xff]   ;;  %v3791_v12 = vld [vmem:[%s5182_s15 + $0x58] sm:$0xff]  }
 0xced   : > { %v2005_v14 = vpop.xlane.xlu0 %2004  ;;  %3425 = vmatprep.subr.bf16.mxu1 %v3780_v38 }
 0xcee   : > { %v2008_v15 = vmul.f32 0.0078125, %v2005_v14  ;;  %v2011_v17 = vmul.f32 %v5404_v13, %v5404_v13  ;;  %v3793_v14 = vld [vmem:[%s5182_s15 + $0x18] sm:$0xff]  }
 0xcf0   : > { %v5408_v18 = vsub.f32 %v1999_v4, %v2008_v15  ;;  %2013 = vadd.xlane.f32.xlu0 %v2011_v17  ;;  %v3781_v4 = vld [vmem:[%s5182_s15] sm:$0xff]   ;;  %v3794_v15 = vld [vmem:[%s5182_s15 + $0x98] sm:$0xff]  }
 0xcf1   : > { %v3795_v17 = vld [vmem:[%s5182_s15 + $0x60] sm:$0xff]  }
 0xcf2   : > { %v2012_v21 = vmul.f32 %v5408_v18, %v5408_v18 }
 0xcf4   : > { %2015 = vadd.xlane.f32.xlu0 %v2012_v21  ;;  %v3797_v21 = vld [vmem:[%s5182_s15 + $0x20] sm:$0xff]  }
 0xd7d   : > { %v2014_v54 = vpop.xlane.xlu0 %2013 }
 0xd7e   : > { %v2017_v55 = vmul.f32 0.0078125, %v2014_v54 }
 0xd80   : > { %v2019_v56 = vadd.f32 1e-12, %v2017_v55 }
 0xd81   : > { %v2016_v22 = vpop.xlane.xlu0 %2015 }
 0xd82   : > { %3843 = vrsqrt.f32 %v2019_v56  ;;  %v2018_v30 = vmul.f32 0.0078125, %v2016_v22 }
 0xd84   : > { %v2020_v57 = vadd.f32 1e-12, %v2018_v30 }
 0xd86   : > { %3845 = vrsqrt.f32 %v2020_v57 }
 0xd8c   : > { %v3844_v34 = vpop.eup %3843 }
 0xd8d   : > { %v2023_v58 = vmul.f32 %v3844_v34, %v5404_v13  ;;  %v3792_v13 = vld [vmem:[%s5182_s15 + $0xd8] sm:$0xff]  }
 0xd8f   : > { %v2031_v62 = vmul.f32 %v3286_v59, %v2023_v58 }
 0xd90   : > { %v3846_v60 = vpop.eup %3845 }
 0xd91   : > { %v2024_v61 = vmul.f32 %v3846_v60, %v5408_v18  ;;  %v5442_v1 = vadd.f32 %v3287_v63, %v2031_v62  ;;  %v3796_v18 = vld [vmem:[%s5182_s15 + $0xe0] sm:$0xff]  }
 0xd93   : > { %v2032_v0 = vmul.f32 %v3286_v59, %v2024_v61 }
 0xd95   : > { %v5444_v2 = vadd.f32 %v3287_v63, %v2032_v0 }
 0xd97   : > { %v2041_v3 = vpack.c.bf16 %v5444_v2, %v5442_v1 }
 0xd99   : > { %2289 = vmatmul.mubr.bf16.vlgmr.msra.gmra.mrb[28].mxu0 %v2041_v3  ;;  %2332 = vmatmul.mubr.bf16.vlgmr.msra.gmra.mrb[28].mxu1 %v2041_v3 }
 0xd9a   : > { %3404 = vmatpush3.bf16.msra.mxu0 %v3781_v4  ;;  %3426 = vmatpush3.bf16.msra.mxu1 %v3782_v5 }
 0xd9b   : > { %3405 = vmatprep.subr.bf16.mxu0 %v3783_v6  ;;  %3427 = vmatprep.subr.bf16.mxu1 %v3784_v7 }
 0xd9e   : > { %3406 = vmatpush3.bf16.msra.mxu0 %v3785_v8  ;;  %3428 = vmatpush3.bf16.msra.mxu1 %v3786_v9 }
 0xd9f   : > { %3407 = vmatprep.subr.bf16.mxu0 %v3787_v10  ;;  %3429 = vmatprep.subr.bf16.mxu1 %v3788_v11 }
 0xda2   : > { %3408 = vmatpush3.bf16.msra.mxu0 %v3789_v19  ;;  %3430 = vmatpush3.bf16.msra.mxu1 %v3790_v20 }
 0xda3   : > { %3409 = vmatprep.subr.bf16.mxu0 %v3791_v12  ;;  %3431 = vmatprep.subr.bf16.mxu1 %v3792_v13 }
 0xda6   : > { %3410 = vmatpush3.bf16.msra.mxu0 %v3793_v14  ;;  %3432 = vmatpush3.bf16.msra.mxu1 %v3794_v15 }
 0xda7   : > { %3411 = vmatprep.subr.bf16.mxu0 %v3795_v17  ;;  %3433 = vmatprep.subr.bf16.mxu1 %v3796_v18 }
 0xdaa   : > { %3412 = vmatpush3.bf16.msra.mxu0 %v3797_v21  ;;  %3434 = vmatpush3.bf16.msra.mxu1 %v3798_v23 }
 0xdab   : > { %3413 = vmatprep.subr.bf16.mxu0 %v3799_v28  ;;  %3435 = vmatprep.subr.bf16.mxu1 %v3800_v29 }
 0xdae   : > { %3414 = vmatpush3.bf16.msra.mxu0 %v3801_v32  ;;  %3436 = vmatpush3.bf16.msra.mxu1 %v3802_v33 }
 0xdaf   : > { %3415 = vmatprep.subr.bf16.mxu0 %v3803_v35  ;;  %3437 = vmatprep.subr.bf16.mxu1 %v3804_v36 }
 0xdb2   : > { %3416 = vmatpush3.bf16.msra.mxu0 %v3805_v26  ;;  %3438 = vmatpush3.bf16.msra.mxu1 %v3806_v37 }
 0xdb3   : > { %3417 = vmatprep.subr.bf16.mxu0 %v3807_v40  ;;  %3439 = vmatprep.subr.bf16.mxu1 %v3808_v53 }
 0xdb6   : > { %3418 = vmatpush3.bf16.msra.mxu0 %v3809_v41  ;;  %3440 = vmatpush3.bf16.msra.mxu1 %v3810_v42 }
 0xe6c   : > { %v2290_v48 = vpop.f32.mrb[28].mxu0  ;;  %v2333_v49 = vpop.f32.mrb[28].mxu1 }
 0xe6d   : > { %v5488_v50 = vadd.f32 %v2290_v48, %v2079_v44  ;;  %v5490_v51 = vadd.f32 %v2333_v49, %v2087_v45  ;;  %v2292_v52 = vpop.f32.mrb[29].mxu0  ;;  %v2335_v54 = vpop.f32.mrb[29].mxu1 }
 0xe6e   : > { %v5492_v55 = vadd.f32 %v2292_v52, %v2083_v46  ;;  %v5494_v56 = vadd.f32 %v2335_v54, %v2091_v47  ;;  %v2294_v25 = vpop.f32.mrb[30].mxu0  ;;  %v2337_v22 = vpop.f32.mrb[30].mxu1 }
 0xe6f   : > { %v2342_v16 = vmul.f32 %v5488_v50, %v5488_v50  ;;  %v2344_v24 = vmul.f32 %v5490_v51, %v5490_v51  ;;  %v5500_v27 = vadd.f32 %v2294_v25, %v2079_v44  ;;  %v5502_v30 = vadd.f32 %v2337_v22, %v2087_v45  ;;  %v2296_v57 = vpop.f32.mrb[31].mxu0  ;;  %v2339_v34 = vpop.f32.mrb[31].mxu1 }
 0xe70   : > { %v2343_v58 = vmul.f32 %v5492_v55, %v5492_v55  ;;  %v2345_v59 = vmul.f32 %v5494_v56, %v5494_v56  ;;  %v5508_v60 = vadd.f32 %v2296_v57, %v2083_v46  ;;  %v5510_v61 = vadd.f32 %v2339_v34, %v2091_v47 }
 0xe71   : > { %v2350_v62 = vmul.f32 %v2342_v16, %v5488_v50  ;;  %v2352_v63 = vmul.f32 %v2344_v24, %v5490_v51  ;;  %v2346_v0 = vmul.f32 %v5500_v27, %v5500_v27  ;;  %v2348_v3 = vmul.f32 %v5502_v30, %v5502_v30 }
 0xe72   : > { %v2351_v39 = vmul.f32 %v2343_v58, %v5492_v55  ;;  %v2353_v38 = vmul.f32 %v2345_v59, %v5494_v56  ;;  %v2347_v4 = vmul.f32 %v5508_v60, %v5508_v60  ;;  %v2349_v5 = vmul.f32 %v5510_v61, %v5510_v61 }
 0xe73   : > { %v2358_v6 = vmul.f32 0.044715, %v2350_v62  ;;  %v2360_v7 = vmul.f32 0.044715, %v2352_v63  ;;  %v2354_v8 = vmul.f32 %v2346_v0, %v5500_v27  ;;  %v2356_v9 = vmul.f32 %v2348_v3, %v5502_v30 }
 0xe74   : > { %v2359_v10 = vmul.f32 0.044715, %v2351_v39  ;;  %v2361_v11 = vmul.f32 0.044715, %v2353_v38  ;;  %v2355_v19 = vmul.f32 %v2347_v4, %v5508_v60  ;;  %v2357_v20 = vmul.f32 %v2349_v5, %v5510_v61 }
 0xe75   : > { %v2366_v12 = vadd.f32 %v2358_v6, %v5488_v50  ;;  %v2368_v13 = vadd.f32 %v2360_v7, %v5490_v51  ;;  %v2362_v14 = vmul.f32 0.044715, %v2354_v8  ;;  %v2364_v15 = vmul.f32 0.044715, %v2356_v9 }
 0xe76   : > { %v2367_v17 = vadd.f32 %v2359_v10, %v5492_v55  ;;  %v2369_v18 = vadd.f32 %v2361_v11, %v5494_v56  ;;  %v2363_v21 = vmul.f32 0.044715, %v2355_v19  ;;  %v2365_v23 = vmul.f32 0.044715, %v2357_v20 }
 0xe77   : > { %v2374_v28 = vmul.f32 0.7978846, %v2366_v12  ;;  %v2376_v29 = vmul.f32 0.7978846, %v2368_v13  ;;  %v2370_v32 = vadd.f32 %v2362_v14, %v5500_v27  ;;  %v2372_v33 = vadd.f32 %v2364_v15, %v5502_v30 }
 0xe78   : > { %v2375_v35 = vmul.f32 0.7978846, %v2367_v17  ;;  %v2377_v36 = vmul.f32 0.7978846, %v2369_v18  ;;  %v2371_v26 = vadd.f32 %v2363_v21, %v5508_v60  ;;  %v2373_v37 = vadd.f32 %v2365_v23, %v5510_v61 }
 0xe79   : > { %3847 = vtanh.f32 %v2374_v28  ;;  %v2378_v40 = vmul.f32 0.7978846, %v2370_v32  ;;  %v2380_v53 = vmul.f32 0.7978846, %v2372_v33 }
 0xe7a   : > { %3849 = vtanh.f32 %v2376_v29  ;;  %v2379_v41 = vmul.f32 0.7978846, %v2371_v26  ;;  %v2381_v42 = vmul.f32 0.7978846, %v2373_v37 }
 0xe7b   : > { %3851 = vtanh.f32 %v2375_v35 }
 0xe7c   : > { %3853 = vtanh.f32 %v2377_v36 }
 0xe7d   : > { %3855 = vtanh.f32 %v2378_v40 }
 0xe7e   : > { %3857 = vtanh.f32 %v2380_v53 }
 0xe7f   : > { %3859 = vtanh.f32 %v2379_v41 }
 0xe80   : > { %3861 = vtanh.f32 %v2381_v42 }
 0xe83   : > { %v3848_v31 = vpop.eup %3847 }
 0xe84   : > { %v3850_v43 = vpop.eup %3849  ;;  %v2390_v44 = vadd.f32 1.0, %v3848_v31 }
 0xe85   : > { %v3852_v45 = vpop.eup %3851  ;;  %v2392_v46 = vadd.f32 1.0, %v3850_v43 }
 0xe86   : > { %v3854_v47 = vpop.eup %3853  ;;  %v2391_v48 = vadd.f32 1.0, %v3852_v45  ;;  %v2398_v25 = vmul.f32 0.5, %v2390_v44 }
 0xe87   : > { %v3856_v49 = vpop.eup %3855  ;;  %v2393_v52 = vadd.f32 1.0, %v3854_v47  ;;  %v2400_v24 = vmul.f32 0.5, %v2392_v46 }
 0xe88   : > { %v3858_v54 = vpop.eup %3857  ;;  %v2394_v22 = vadd.f32 1.0, %v3856_v49  ;;  %v2399_v62 = vmul.f32 0.5, %v2391_v48  ;;  %v2406_v39 = vmul.f32 %v2398_v25, %v5488_v50  ;;  %v3353_v48 = vld [vmem:[%s848_s28] ss:$0 sm:$0xff] }
 0xe89   : > { %v3860_v16 = vpop.eup %3859  ;;  %v2396_v57 = vadd.f32 1.0, %v3858_v54  ;;  %v2401_v3 = vmul.f32 0.5, %v2393_v52  ;;  %v2408_v5 = vmul.f32 %v2400_v24, %v5490_v51  ;;  %v3354_v52 = vld [vmem:[%s856_s2] ss:$0 sm:$0xff] }
 0xe8a   : > { %v3862_v34 = vpop.eup %3861  ;;  %v2402_v58 = vmul.f32 0.5, %v2394_v22  ;;  %v2395_v59 = vadd.f32 1.0, %v3860_v16  ;;  %v2407_v8 = vmul.f32 %v2399_v62, %v5492_v55 }
 0xe8b   : > { %v2404_v63 = vmul.f32 0.5, %v2396_v57  ;;  %v2397_v0 = vadd.f32 1.0, %v3862_v34  ;;  %v2409_v11 = vmul.f32 %v2401_v3, %v5494_v56 }
 0xe8c   : > { %v2410_v38 = vmul.f32 %v2402_v58, %v5500_v27  ;;  %v2403_v4 = vmul.f32 0.5, %v2395_v59 }
 0xe8d   : > { %v2412_v6 = vmul.f32 %v2404_v63, %v5502_v30  ;;  %v2405_v7 = vmul.f32 0.5, %v2397_v0  ;;  %v3320_v30 = vld [vmem:[%s840_s9] ss:$0 sm:$0xff]  ;;  %s5732_s9 = sld [smem:[#allocation44_spill]] }
 0xe8e   : > { %v2411_v9 = vmul.f32 %v2403_v4, %v5508_v60  ;;  %v2414_v10 = vpack.c.bf16 %v2410_v38, %v2406_v39 }
 0xe8f   : > { %v2413_v19 = vmul.f32 %v2405_v7, %v5510_v61  ;;  %v2416_v20 = vpack.c.bf16 %v2412_v6, %v2408_v5 }
 0xe90   : > { %v2415_v50 = vpack.c.bf16 %v2411_v9, %v2407_v8 }
 0xe91   : > { %v2417_v12 = vpack.c.bf16 %v2413_v19, %v2409_v11 }
 0xe92   : > { %2713 = vmatprep.mubr.bf16.mxu0 %v2415_v50 }
 0xe93   : > { %2754 = vmatprep.mubr.bf16.mxu1 %v2417_v12  ;;  %2714 = vmatmul.mubr.bf16.vlgmr.msra.gmra.mrb[32].mxu0 %v2414_v10  ;;  %p3355_p5 = scmp.ne.s32.totalorder %s5732_s9, 1 }
 0xe94   : > { %2755 = vmatmul.mubr.bf16.vlgmr.msra.gmra.mrb[32].mxu1 %v2416_v20  ;;  %s5733_s14 = sld [smem:[#allocation45_spill]] (!%p3355_p5)  ;;  %vm2839_vm3 = vcmask (!%p3355_p5), 1040384   ;;  %vm2841_vm4 = vcmask (!%p3355_p5), 1041408  }
 0xe9a   : > { %s3356_s1 = sshll.u32 (!%p3355_p5), %s5733_s14, 7 }
 0xe9b   : > { %s2812_s15 = sld [smem:[#allocation4 + %s3356_s1]] (!%p3355_p5)  ;;  %s2815_s30 = sadd.s32 (!%p3355_p5), 1, %s3356_s1 }
 0xe9c   : > { %s2816_s18 = sld [smem:[#allocation4 + %s2815_s30]] (!%p3355_p5)  ;;  %s2820_s28 = sadd.s32 (!%p3355_p5), 2, %s3356_s1 }
 0xe9d   : > { %s2821_s19 = sld [smem:[#allocation4 + %s2820_s28]] (!%p3355_p5)  ;;  %s2824_s29 = sadd.s32 (!%p3355_p5), 3, %s3356_s1 }
 0xe9e   : > { %s2825_s2 = sld [smem:[#allocation4 + %s2824_s29]] (!%p3355_p5)  ;;  %s2829_s4 = sadd.s32 (!%p3355_p5), 4, %s3356_s1 }
 0xe9f   : > { %s2830_s13 = sld [smem:[#allocation4 + %s2829_s4]] (!%p3355_p5) }
 0xea1   : > { %s2813_s27 = scalar_lea.vmem (!%p3355_p5), [#allocation2], %s2812_s15 }
 0xea2   : > { %s2817_s11 = scalar_lea.vmem (!%p3355_p5), [#allocation2], %s2816_s18 }
 0xea3   : > { %s2822_s0 = scalar_lea.vmem (!%p3355_p5), [#allocation2], %s2821_s19 }
 0xea4   : > { %s2826_s24 = scalar_lea.vmem (!%p3355_p5), [#allocation2], %s2825_s2 }
 0xea5   : > { %s2831_s9 = scalar_lea.vmem (!%p3355_p5), [#allocation2], %s2830_s13 }
 0xf66   : > { %v3419_v51 = vpop.f32.mrb[32].mxu0 }
 0xf67   : > { %v3441_v27 = vpop.f32.mrb[32].mxu1  ;;  %v3420_v13 = vpop.f32.mrb[33].mxu0 }
 0xf68   : > { %v3421_v55 = vadd.f32 %v3420_v13, %v3419_v51  ;;  %v3442_v14 = vpop.f32.mrb[33].mxu1  ;;  %v3422_v60 = vpop.f32.mrb[34].mxu0 }
 0xf69   : > { %v3443_v15 = vadd.f32 %v3442_v14, %v3441_v27  ;;  %v3444_v17 = vpop.f32.mrb[34].mxu1  ;;  %v3423_v56 = vpop.f32.mrb[35].mxu0 }
 0xf6a   : > { %v2716_v18 = vadd.f32 %v3421_v55, %v3320_v30  ;;  %v3424_v61 = vadd.f32 %v3423_v56, %v3422_v60  ;;  %v3445_v21 = vpop.f32.mrb[35].mxu1 }
 0xf6b   : > { %v3446_v23 = vadd.f32 %v3445_v21, %v3444_v17 }
 0xf6c   : > { %v2757_v28 = vadd.f32 %v3443_v15, %v2716_v18  ;;  %v2719_v29 = vadd.f32 %v3424_v61, %v3320_v30 }
 0xf6e   : > { %v2760_v32 = vadd.f32 %v3446_v23, %v2719_v29  ;;  %v2763_v33 = vadd.f32 %v2757_v28, %v5442_v1 }
 0xf70   : > { %2767 = vadd.xlane.f32.xlu1 %v2763_v33  ;;  %v2764_v35 = vadd.f32 %v2760_v32, %v5444_v2 }
 0xf72   : > { %2769 = vadd.xlane.f32.xlu0 %v2764_v35 }
 0xffd   : > { %v2768_v36 = vpop.xlane.xlu1 %2767 }
 0xffe   : > { %v2771_v26 = vmul.f32 0.0078125, %v2768_v36 }
 0xfff   : > { %v2770_v37 = vpop.xlane.xlu0 %2769 }
0x1000   : > { %v2773_v40 = vsub.f32 %v2763_v33, %v2771_v26  ;;  %v2772_v53 = vmul.f32 0.0078125, %v2770_v37 }
0x1002   : > { %v2774_v41 = vsub.f32 %v2764_v35, %v2772_v53  ;;  %v2775_v42 = vmul.f32 %v2773_v40, %v2773_v40 }
0x1004   : > { %2777 = vadd.xlane.f32.xlu0 %v2775_v42  ;;  %v2776_v31 = vmul.f32 %v2774_v41, %v2774_v41 }
0x1008   : > { %2779 = vadd.xlane.f32.xlu0 %v2776_v31 }
0x1091   : > { %v2778_v43 = vpop.xlane.xlu0 %2777 }
0x1092   : > { %v2781_v44 = vmul.f32 0.0078125, %v2778_v43 }
0x1094   : > { %v2783_v45 = vadd.f32 1e-12, %v2781_v44 }
0x1095   : > { %v2780_v1 = vpop.xlane.xlu0 %2779 }
0x1096   : > { %3863 = vrsqrt.f32 %v2783_v45  ;;  %v2782_v46 = vmul.f32 0.0078125, %v2780_v1 }
0x1098   : > { %v2784_v2 = vadd.f32 1e-12, %v2782_v46 }
0x109a   : > { %3865 = vrsqrt.f32 %v2784_v2 }
0x10a0   : > { %v3864_v47 = vpop.eup %3863 }
0x10a1   : > { %v2787_v49 = vmul.f32 %v3864_v47, %v2773_v40 }
0x10a3   : > { %v2795_v54 = vmul.f32 %v3353_v48, %v2787_v49 }
0x10a4   : > { %v3866_v25 = vpop.eup %3865 }
0x10a5   : > { %v2803_v22 = vadd.f32 %v3354_v52, %v2795_v54  ;;  %v2788_v16 = vmul.f32 %v3866_v25, %v2774_v41  ;;  %2810 = sbr.rel (%p3355_p5) target bundleno = 4285 (0x10bd), region = 140 }
0x10a7   : > { %2805 = vst [vmem:[#allocation2] sm:$0xff] %v2803_v22  ;;  %v2796_v24 = vmul.f32 %v3353_v48, %v2788_v16 }
0x10a9   : > { %v2804_v57 = vadd.f32 %v3354_v52, %v2796_v24 }
0x10ab   : > { %2806 = vst [vmem:[#allocation2 + $0x8] sm:$0xff] %v2804_v57 }
0x10b2   : > { %v2814_v34 = vld [vmem:[%s2813_s27] sm:$0x1] }
0x10b3   : > { %v2818_v58 = vld [vmem:[%s2817_s11] sm:$0x1] }
0x10b4   : > { %v2823_v59 = vld [vmem:[%s2822_s0] sm:$0x1]  ;;  %v2819_v63 = vadd.f32 %v2818_v58, %v2814_v34 }
0x10b5   : > { %v2827_v62 = vld [vmem:[%s2826_s24] sm:$0x1] }
0x10b6   : > { %v2828_v0 = vadd.f32 %v2827_v62, %v2823_v59  ;;  %v2832_v3 = vld [vmem:[%s2831_s9] sm:$0x1] }
0x10b7   : > { %v2837_v39 = vrot.slane %v2832_v3, 6 }
0x10b8   : > { %v2834_v38 = vrot.slane %v2828_v0, 7 }
0x10ba   : > { %v2840_v4 = vsel %vm2839_vm3, %v2819_v63, %v2834_v38 }
0x10bb   : > { %v2842_v5 = vsel %vm2841_vm4, %v2840_v4, %v2837_v39 }
0x10bc   : > { %2843 = vst [vmem:[%s5198_s17] sm:$0x7] %v2842_v5 }
0x10bd PF: > { %s5734_s14 = sld [smem:[#allocation45_spill]]  ;;  %s5735_s1 = sld [smem:[#allocation53_spill]] }
0x10be   : > { %s5736_s28 = sld [smem:[#allocation64_spill]]  ;;  %s2858_s29 = sshll.u32 %s5198_s17, 4  ;;  %s2859_s29 = int_to_ptr.vmem [resolvable:$true] %s2858_s29 }
0x10bf   : > { %s2845_s4 = scalar_lea.sflag [#allocation7], %s5118_s23  ;;  %s4269_s13 = scalar_lea.vmem %s2859_s29, 64 }
0x10c0   : > { %p4270_p11 = scmp.ne.s32.totalorder %s2859_s29, %s4269_s13  ;;  %s4456_s27 = smov [#allocation28]  }
0x10c1   : > { %s4273_s11 = sshll.u32 %s4456_s27, 4  ;;  %s4274_s11 = int_to_ptr.vmem [resolvable:$false] %s4273_s11 }
0x10c2   : > { %s4275_s0 = scalar_lea.vmem %s4274_s11, 128  ;;  %p4276_p9 = scmp.lt.s32.totalorder %s2859_s29, %s4274_s11 }
0x10c3   : > { %s3358_s15 = sshll.u32 %s5734_s14, 6  ;;  %p5738_p12 = scmp.ne.s32.totalorder %s5735_s1, 0 }
0x10c4   : > { %s5737_s2 = smov %s5736_s28  ;;  %s5559_s19 = scalar_lea.hbm %s5736_s28, %s3358_s15 }
0x10c5   : > { %p4271_p4 = pnand %p4270_p11, %p5738_p12  ;;  %p4277_p1 = scmp.lt.s32.totalorder %s4275_s0, %s4269_s13 }
0x10c7   : > { %p4272_p0 = pneg %p4271_p4  ;;  %p4278_p2 = por %p4277_p1, %p4276_p9 }
0x10c9   : > { %p4279_p7 = pnand %p4278_p2, %p4272_p0 }
0x10cb   : > { %4282 = shalt.err (!%p4279_p7)
}
0x10cc   : > { %s4283_s23 = scalar_lea.hbm %s5559_s19, 64  ;;  %s4287_s9 = scalar_lea.hbm %s5737_s2, 128 }
0x10cd   : > { %p4284_p3 = scmp.ne.s32.totalorder %s5559_s19, %s4283_s23  ;;  %p4288_p10 = scmp.lt.u32.totalorder %s5559_s19, %s5737_s2 }
0x10ce   : > { %p4289_p6 = scmp.lt.u32.totalorder %s4287_s9, %s4283_s23  ;;  %p4291_p11 = scmp.lt.u32.totalorder %s4283_s23, %s5559_s19 }
0x10cf   : > { %p4285_p13 = pnand %p4284_p3, %p5738_p12 }
0x10d0   : > { %p4290_p5 = por %p4289_p6, %p4288_p10 }
0x10d1   : > { %p4286_p8 = pneg %p4285_p13 }
0x10d2   : > { %p4292_p4 = por %p4291_p11, %p4290_p5 }
0x10d4   : > { %p4293_p0 = pnand %p4292_p4, %p4286_p8 }
0x10d6   : > { %4296 = shalt.err (!%p4293_p0)
}
0x10d7   : > { %3581 = dma.vmem_to_hbm [thread:$0]  (%p5738_p12), %s2859_s29, 64, %s5559_s19, %s2845_s4  }
0x10d8 PF: > { %s5739_s30 = sld [smem:[#allocation42_spill]]  ;;  %s5740_s18 = sld [smem:[#allocation54_spill]] }
0x10d9   : > { %p3587_p9 = scmp.ge.s32.totalorder %s4425_s22, 2 }
0x10de   : > { %s2870_s28 = sand.u32 1, %s5739_s30   ;;  %p5741_p1 = scmp.ne.s32.totalorder %s5740_s18, 0 }
0x10df   : > { %s2871_s13 = scalar_lea.sflag [#allocation7], %s2870_s28 }
0x10e0   : > { %p3584_p2 = pnand %p3587_p9, %p5741_p1 }
0x10e2   : > { %4380 = dma.done.wait (!%p3584_p2), %s2871_s13, 64  }
0x10e3   : > { %4382 = vsyncadd (!%p3584_p2), %s2871_s13, 4294967232  ;;  %s56_s22 = sadd.s32 1, %s4425_s22   ;;  %s5742_s0 = sld [smem:[#allocation40_spill]] }
0x10e4   : > { %p53_p7 = scmp.ge.s32.totalorder %s56_s22, 6   ;;  %s5743_s28 = sld [smem:[#allocation41_spill]] }
0x10e5   : > { %s5744_s29 = sld [smem:[#allocation50_spill]]  ;;  %s5745_s1 = sld [smem:[#allocation43_spill]] }
0x10e6   : > { %s5746_s17 = sld [smem:[#allocation51_spill]]  ;;  %s5747_s4 = sld [smem:[#allocation47_spill]] }
0x10e7   : > { %s5748_s27 = sld [smem:[#allocation48_spill]]  ;;  %s5749_s30 = smov %s4401_s16 }
0x10e8   : > { %s5751_s18 = smov %s4417_s20  ;;  %s5752_s19 = smov %s4421_s21 }
0x10e9   :  { %55 = sbr.rel (!%p53_p7) target bundleno = 40 (0x28), region = 291 }
0x10eb   : > { %s5750_s16 = smov %s5745_s1 }
0x10ec   : > { %s5753_s20 = smov %s5747_s4 }
0x10ed   : > { %s5754_s21 = smov %s5748_s27 }
0x10f0   :  { %2876 = vsyncpa [#allocation6], 1 }
0x10f1   :  { %2878 = vsyncpa [#allocation6 + $0x1], 1 }
0x10f2   :  { %2879 = vsyncpa [#allocation9], 1 }
0x10f3   :  { %2881 = vsyncpa [#allocation9 + $0x1], 1 }
0x10f4   :  { %2882 = vsyncpa [#allocation12], 1 }
0x10f5   :  { %2884 = vsyncpa [#allocation12 + $0x1], 1 }
0x10f6   :  { %2885 = vsyncpa [#allocation15], 1 }
0x10f7   :  { %2887 = vsyncpa [#allocation15 + $0x1], 1 }
0x10f8   :  { %2888 = vsyncpa [#allocation18], 1 }
0x10f9   :  { %2890 = vsyncpa [#allocation18 + $0x1], 1 }
0x10fa   :  { %2891 = vsyncpa [#allocation21], 1 }
0x10fb   :  { %2893 = vsyncpa [#allocation21 + $0x1], 1 }
0x10fc   :  { %2894 = vsyncpa [#allocation24], 1 }
0x10fd   :  { %2896 = vsyncpa [#allocation24 + $0x1], 1 }
0x10fe   :  { %2897 = vsyncpa [#allocation27], 1 }
0x10ff   :  { %2899 = vsyncpa [#allocation27 + $0x1], 1 }
0x1100   :  { %2900 = vsyncpa [#allocation7], 1 }
0x1101   :  { %2902 = vsyncpa [#allocation7 + $0x1], 1 }

</bundles_post_ra>
